<compile_context>
chip_gen: v5e
topology: v5e:2x2
jax: 0.10.0
libtpu: 0.0.40
codegen_flags: <defaults>
</compile_context>

<pallas_src>
import jax
import jax.numpy as jnp
from jax import lax
from jax.experimental import pallas as pl
from jax.experimental.pallas import tpu as pltpu

LANES = 128
SUBLANES = 8
F32 = 4  # bytes


def _rup(x, m):
    return -(-x // m) * m


def _detect_vmem_limit():
    """Generation-aware VMEM limit (bytes) used for compiler_params AND tiling."""
    cap = None
    try:
        info_fn = getattr(pltpu, "get_tpu_info", None)
        if info_fn is not None:
            cap = getattr(info_fn(), "vmem_capacity_bytes", None)
    except Exception:
        cap = None
    if not cap:
        cap = 64 * 1024 * 1024          # most restrictive: v7x per-TensorCore
    # headroom for Mosaic internal scratch: v5e/v6e -> 96 MiB, v7x -> 48 MiB
    return min(96 * 1024 * 1024, int(0.75 * cap))


_VMEM_LIMIT = _detect_vmem_limit()


def _step_vmem_bytes(bt, ht, w, cin, k_pad, cout_p):
    """Conservative per-grid-step VMEM footprint: lane/sublane padding of every
    block, pipeline double-buffering, and in-kernel temporaries."""
    in_blk = bt * (ht + 2) * _rup(w + 2, SUBLANES) * _rup(cin, LANES) * F32
    out_blk = bt * ht * _rup(w, SUBLANES) * cout_p * F32
    w_blk = _rup(k_pad, SUBLANES) * cout_p * F32
    b_blk = SUBLANES * cout_p * F32
    m_rows = _rup(bt * ht * w, SUBLANES)
    patches = m_rows * k_pad * F32           # im2col slab (+ reshape copy below)
    acc = m_rows * cout_p * F32              # f32 matmul accumulator
    pipeline = 2 * (in_blk + out_blk + w_blk + b_blk)   # double-buffered blocks
    temps = in_blk + 2 * patches + acc + out_blk        # x copy, lhs, acc, staging
    return pipeline + int(1.25 * temps)


def _choose_tiles(n, h, w, cin, k_pad, cout_p, budget):
    """Pick (bt, ht): images per grid step and H-band height (divisor of h)."""
    divisors = [d for d in range(h, 0, -1) if h % d == 0]

    def fits(bt, ht):
        return _step_vmem_bytes(bt, ht, w, cin, k_pad, cout_p) <= budget

    # Largest band height that fits at bt=1, then largest bt at that band height.
    ht = next((d for d in divisors if fits(1, d)), divisors[-1])
    bt = next((b for b in range(n, 0, -1) if fits(b, ht)), 1)

    # Ensure >= 2 grid steps when the problem allows it (v7x megacore + pipeline
    # overlap); splitting a fitting tile only shrinks the footprint.
    steps = (-(-n // bt)) * (h // ht)
    if steps < 2:
        if n >= 2:
            bt = -(-n // 2)
        else:
            smaller = [d for d in divisors if d < ht]
            if smaller:
                ht = smaller[0]
    return bt, ht


def conv_block_kernel(x_ref, w_ref, b_ref, o_ref):
    """One (bt images) x (one H band) tile.

    x_ref : (bt, Ht+2, W+2, Cin)   zero/halo-padded input band
    w_ref : (K_pad, Cout_p)        im2col weights, K and Cout zero-padded
    b_ref : (1, Cout_p)            bias, lane-padded with zeros
    o_ref : (bt, Ht, W, Cout_p)    lane-dense output band
    """
    bt, hp2, wp2, cin = x_ref.shape
    h, w = hp2 - 2, wp2 - 2
    k_pad, cout_p = w_ref.shape

    x = x_ref[...]                                       # (bt, Ht+2, W+2, Cin)

    # im2col: 9 shifted windows concatenated along channels (dy-major, dx, ci),
    # plus a zero tap so K is a multiple of 128 (lane-dense MXU feed).
    taps = [x[:, dy:dy + h, dx:dx + w, :] for dy in range(3) for dx in range(3)]
    if k_pad > 9 * cin:
        taps.append(jnp.zeros((bt, h, w, k_pad - 9 * cin), x.dtype))
    lhs = jnp.concatenate(taps, axis=-1).reshape(bt * h * w, k_pad)

    # One MXU contraction for the whole tile, f32 accumulation (torch parity).
    # TODO(synk): for very large Cin split into 3 dy-chunks accumulated in a
    # VMEM scratch so the live im2col slab is 3x (not 9x) the input tile; also
    # optionally bf16-cast lhs/weights behind a flag for ~3x MXU throughput.
    acc = jnp.dot(lhs, w_ref[...], preferred_element_type=jnp.float32)
    acc = acc + b_ref[...].astype(jnp.float32)
    acc = jnp.where(acc >= 0, acc, 0.2 * acc)            # LeakyReLU(0.2)

    o_ref[...] = acc.reshape(bt, h, w, cout_p).astype(o_ref.dtype)


def conv_block_forward(x_nchw, weight, bias):
    """Forward matching torch ConvBlock(ndims=2, stride=1).

    x_nchw : (N, Cin, H, W) float32
    weight : (Cout, Cin, 3, 3) float32    (PyTorch weight layout)
    bias   : (Cout,) float32
    returns: (N, Cout, H, W) float32
    """
    N, Cin, H, W = x_nchw.shape
    Cout = weight.shape[0]
    Cout_p = _rup(Cout, LANES)
    K = 9 * Cin
    K_pad = _rup(K, LANES)

    budget = int(0.85 * _VMEM_LIMIT)
    bt, Ht = _choose_tiles(N, H, W, Cin, K_pad, Cout_p, budget)
    nH = H // Ht
    N_pad = _rup(N, bt)

    # NCHW -> NHWC, spatial zero-pad (conv padding=1), batch pad to a multiple of
    # bt, then pre-extract overlapping H bands (2-row halo) so plain Blocked
    # BlockSpecs tile H with no overlapping-block / Element indexing.
    x_nhwc = jnp.transpose(x_nchw, (0, 2, 3, 1))
    x_pad = jnp.pad(x_nhwc, ((0, N_pad - N), (1, 1), (1, 1), (0, 0)))
    if nH == 1:
        x_bands = x_pad[:, None]                       # (N_pad, 1, H+2, W+2, Cin)
    else:
        x_bands = jnp.stack(
            [x_pad[:, i * Ht:i * Ht + Ht + 2] for i in range(nH)], axis=1)

    # (Cout, Cin, kh, kw) -> (kh, kw, Cin, Cout) -> (9*Cin, Cout), then zero-pad
    # K rows to K_pad and Cout lanes to Cout_p.
    w2d = jnp.transpose(weight, (2, 3, 1, 0)).reshape(K, Cout)
    w2d = jnp.pad(w2d, ((0, K_pad - K), (0, Cout_p - Cout)))
    b2d = jnp.pad(bias.reshape(1, Cout), ((0, 0), (0, Cout_p - Cout)))

    grid = (N_pad // bt, nH)

    out_bands = pl.pallas_call(
        conv_block_kernel,
        out_shape=jax.ShapeDtypeStruct((N_pad, nH, Ht, W, Cout_p), x_nchw.dtype),
        grid_spec=pltpu.PrefetchScalarGridSpec(
            num_scalar_prefetch=0,
            grid=grid,
            in_specs=[
                pl.BlockSpec((bt, None, Ht + 2, W + 2, Cin),
                             lambda n, h: (n, h, 0, 0, 0)),
                # Grid-invariant weights/bias stay resident across the grid.
                # TODO(synk): pipeline_mode=pl.Buffered(1) to reclaim their
                # double-buffer VMEM once Cin is large enough for it to matter.
                pl.BlockSpec((K_pad, Cout_p), lambda n, h: (0, 0)),
                pl.BlockSpec((1, Cout_p), lambda n, h: (0, 0)),
            ],
            out_specs=pl.BlockSpec((bt, None, Ht, W, Cout_p),
                                   lambda n, h: (n, h, 0, 0, 0)),
        ),
        compiler_params=pltpu.CompilerParams(
            dimension_semantics=("parallel", "parallel"),
            vmem_limit_bytes=_VMEM_LIMIT,
        ),
    )(x_bands, w2d, b2d)

    # (N_pad, nH, Ht, W, Cout_p) -> (N, H, W, Cout) -> NCHW (fused under jit).
    out = out_bands.reshape(N_pad, H, W, Cout_p)[:N, :, :, :Cout]
    return jnp.transpose(out, (0, 3, 1, 2))


def reference_forward(x_nchw, weight, bias):
    """Pure-JAX reference (same semantics as nn.Conv2d + LeakyReLU(0.2))."""
    out = lax.conv_general_dilated(
        x_nchw, weight,
        window_strides=(1, 1),
        padding=((1, 1), (1, 1)),
        dimension_numbers=("NCHW", "OIHW", "NCHW"),
    )
    out = out + bias.reshape(1, -1, 1, 1)
    return jnp.where(out >= 0, out, 0.2 * out)


if __name__ == "__main__":
    key = jax.random.PRNGKey(0)
    k_x, k_w, k_b = jax.random.split(key, 3)

    N, Cin, H, W = 2, 4, 16, 16
    Cout = 8

    x = jax.random.normal(k_x, (N, Cin, H, W), dtype=jnp.float32)
    # Deterministic parameter init (uniform in [-bound, bound], like PyTorch's
    # default kaiming-uniform fan-in scaling for a 3x3 conv).
    fan_in = Cin * 3 * 3
    bound = 1.0 / jnp.sqrt(fan_in)
    weight = jax.random.uniform(k_w, (Cout, Cin, 3, 3),
                                minval=-bound, maxval=bound, dtype=jnp.float32)
    bias = jax.random.uniform(k_b, (Cout,),
                              minval=-bound, maxval=bound, dtype=jnp.float32)

    fwd = jax.jit(conv_block_forward)
    out = jax.block_until_ready(fwd(x, weight, bias))

    ref = jax.block_until_ready(reference_forward(x, weight, bias))
    assert out.shape == (N, Cout, H, W)
    assert jnp.allclose(out, ref, atol=1e-5, rtol=1e-5), "mismatch vs reference"

    print("KERNEL_OK")
</pallas_src>

<mosaic_0001>
module attributes {stable_mosaic.version = 11 : i64} {
  func.func @conv_block_kernel(%arg0: i32, %arg1: i32, %arg2: memref<1x1x18x18x4xf32, #tpu.memory_space<vmem>>, %arg3: memref<128x128xf32, #tpu.memory_space<vmem>>, %arg4: memref<1x128xf32, #tpu.memory_space<vmem>>, %arg5: memref<1x1x16x16x128xf32, #tpu.memory_space<vmem>>) attributes {dimension_semantics = [#tpu.dimension_semantics<parallel>, #tpu.dimension_semantics<parallel>], iteration_bounds = array<i64: 2, 1>, scalar_prefetch = 0 : i64, scratch_operands = 0 : i64, tpu.core_type = #tpu.core_type<tc>, window_params = [{transform_indices = @transform_0, window_bounds = array<i64: 1, 1, 18, 18, 4>}, {pipeline_mode = #tpu.pipeline_mode<synchronous>, transform_indices = @transform_1, window_bounds = array<i64: 128, 128>}, {pipeline_mode = #tpu.pipeline_mode<synchronous>, transform_indices = @transform_2, window_bounds = array<i64: 1, 128>}, {transform_indices = @transform_3, window_bounds = array<i64: 1, 1, 16, 16, 128>}]} {
    %c0 = arith.constant 0 : index
    %c0_0 = arith.constant 0 : index
    %c0_1 = arith.constant 0 : index
    %c0_2 = arith.constant 0 : index
    %c0_3 = arith.constant 0 : index
    %0 = vector.load %arg2[%c0, %c0_0, %c0_1, %c0_2, %c0_3] : memref<1x1x18x18x4xf32, #tpu.memory_space<vmem>>, vector<1x1x18x18x4xf32>
    %1 = vector.shape_cast %0 : vector<1x1x18x18x4xf32> to vector<1x18x18x4xf32>
    %2 = vector.extract_strided_slice %1 {offsets = [0, 0, 0, 0], sizes = [1, 16, 16, 4], strides = [1, 1, 1, 1]} : vector<1x18x18x4xf32> to vector<1x16x16x4xf32>
    %3 = vector.extract_strided_slice %1 {offsets = [0, 0, 1, 0], sizes = [1, 16, 16, 4], strides = [1, 1, 1, 1]} : vector<1x18x18x4xf32> to vector<1x16x16x4xf32>
    %4 = vector.extract_strided_slice %1 {offsets = [0, 0, 2, 0], sizes = [1, 16, 16, 4], strides = [1, 1, 1, 1]} : vector<1x18x18x4xf32> to vector<1x16x16x4xf32>
    %5 = vector.extract_strided_slice %1 {offsets = [0, 1, 0, 0], sizes = [1, 16, 16, 4], strides = [1, 1, 1, 1]} : vector<1x18x18x4xf32> to vector<1x16x16x4xf32>
    %6 = vector.extract_strided_slice %1 {offsets = [0, 1, 1, 0], sizes = [1, 16, 16, 4], strides = [1, 1, 1, 1]} : vector<1x18x18x4xf32> to vector<1x16x16x4xf32>
    %7 = vector.extract_strided_slice %1 {offsets = [0, 1, 2, 0], sizes = [1, 16, 16, 4], strides = [1, 1, 1, 1]} : vector<1x18x18x4xf32> to vector<1x16x16x4xf32>
    %8 = vector.extract_strided_slice %1 {offsets = [0, 2, 0, 0], sizes = [1, 16, 16, 4], strides = [1, 1, 1, 1]} : vector<1x18x18x4xf32> to vector<1x16x16x4xf32>
    %9 = vector.extract_strided_slice %1 {offsets = [0, 2, 1, 0], sizes = [1, 16, 16, 4], strides = [1, 1, 1, 1]} : vector<1x18x18x4xf32> to vector<1x16x16x4xf32>
    %10 = vector.extract_strided_slice %1 {offsets = [0, 2, 2, 0], sizes = [1, 16, 16, 4], strides = [1, 1, 1, 1]} : vector<1x18x18x4xf32> to vector<1x16x16x4xf32>
    %cst = arith.constant 0.000000e+00 : f32
    %11 = vector.broadcast %cst : f32 to vector<1x16x16x92xf32>
    %12 = tpu.concatenate %2, %3, %4, %5, %6, %7, %8, %9, %10, %11 in 3 : vector<1x16x16x4xf32>, vector<1x16x16x4xf32>, vector<1x16x16x4xf32>, vector<1x16x16x4xf32>, vector<1x16x16x4xf32>, vector<1x16x16x4xf32>, vector<1x16x16x4xf32>, vector<1x16x16x4xf32>, vector<1x16x16x4xf32>, vector<1x16x16x92xf32> -> vector<1x16x16x128xf32>
    %13 = vector.shape_cast %12 : vector<1x16x16x128xf32> to vector<256x128xf32>
    %c0_4 = arith.constant 0 : index
    %c0_5 = arith.constant 0 : index
    %14 = vector.load %arg3[%c0_4, %c0_5] : memref<128x128xf32, #tpu.memory_space<vmem>>, vector<128x128xf32>
    %cst_6 = arith.constant dense<0.000000e+00> : vector<256x128xf32>
    %15 = tpu.matmul %13, %14, %cst_6 {dimension_numbers = #tpu.dot_dimension_numbers<[1], [0], [0], [1], [0, 0, 1, 1], [], []>} : vector<256x128xf32>, vector<128x128xf32>, vector<256x128xf32> -> vector<256x128xf32>
    %c0_7 = arith.constant 0 : index
    %c0_8 = arith.constant 0 : index
    %16 = vector.load %arg4[%c0_7, %c0_8] : memref<1x128xf32, #tpu.memory_space<vmem>>, vector<1x128xf32>
    %17 = vector.broadcast %16 : vector<1x128xf32> to vector<256x128xf32>
    %18 = arith.addf %15, %17 : vector<256x128xf32>
    %cst_9 = arith.constant 0.000000e+00 : f32
    %19 = vector.broadcast %cst_9 : f32 to vector<256x128xf32>
    %20 = arith.cmpf oge, %18, %19 : vector<256x128xf32>
    %cst_10 = arith.constant 2.000000e-01 : f32
    %21 = vector.broadcast %cst_10 : f32 to vector<256x128xf32>
    %22 = arith.mulf %21, %18 : vector<256x128xf32>
    %23 = arith.select %20, %18, %22 : vector<256x128xi1>, vector<256x128xf32>
    %24 = vector.shape_cast %23 : vector<256x128xf32> to vector<1x16x16x128xf32>
    %c0_11 = arith.constant 0 : index
    %c0_12 = arith.constant 0 : index
    %c0_13 = arith.constant 0 : index
    %c0_14 = arith.constant 0 : index
    %c0_15 = arith.constant 0 : index
    %25 = vector.load %arg5[%c0_11, %c0_12, %c0_13, %c0_14, %c0_15] : memref<1x1x16x16x128xf32, #tpu.memory_space<vmem>>, vector<1x1x16x16x128xf32>
    %26 = vector.shape_cast %25 : vector<1x1x16x16x128xf32> to vector<1x16x16x128xf32>
    %27 = vector.shape_cast %24 : vector<1x16x16x128xf32> to vector<1x1x16x16x128xf32>
    tpu.vector_store %arg5[%c0_11, %c0_12, %c0_13, %c0_14, %c0_15], %27 {strides = array<i32>} : memref<1x1x16x16x128xf32, #tpu.memory_space<vmem>>, vector<1x1x16x16x128xf32>,
    return
  }
  func.func @transform_0(%arg0: i32, %arg1: i32) -> (i32, i32, i32, i32, i32) {
    %c0_i32 = arith.constant 0 : i32
    %c0_i32_0 = arith.constant 0 : i32
    %c0_i32_1 = arith.constant 0 : i32
    %c0_i32_2 = arith.constant 0 : i32
    return %arg0, %arg1, %c0_i32, %c0_i32_0, %c0_i32_1 : i32, i32, i32, i32, i32
  }
  func.func @transform_1(%arg0: i32, %arg1: i32) -> (i32, i32) {
    %c0_i32 = arith.constant 0 : i32
    %c0_i32_0 = arith.constant 0 : i32
    %c0_i32_1 = arith.constant 0 : i32
    return %c0_i32, %c0_i32_0 : i32, i32
  }
  func.func @transform_2(%arg0: i32, %arg1: i32) -> (i32, i32) {
    %c0_i32 = arith.constant 0 : i32
    %c0_i32_0 = arith.constant 0 : i32
    %c0_i32_1 = arith.constant 0 : i32
    return %c0_i32, %c0_i32_0 : i32, i32
  }
  func.func @transform_3(%arg0: i32, %arg1: i32) -> (i32, i32, i32, i32, i32) {
    %c0_i32 = arith.constant 0 : i32
    %c0_i32_0 = arith.constant 0 : i32
    %c0_i32_1 = arith.constant 0 : i32
    %c0_i32_2 = arith.constant 0 : i32
    return %arg0, %arg1, %c0_i32, %c0_i32_0, %c0_i32_1 : i32, i32, i32, i32, i32
  }
}

</mosaic_0001>

<bundles_post_ra>
// kernel: conv_block_forward.1
= control target key start
LH: loop header
LB: loop body
LE: loop exit
PB: predicated region body
PF: predicated region fallthrough
CT: control target
= control target key end

     0   :  { %s2122_s12 = smov 0   ;;  %s2124_s13 = smov 0   ;;  %s4100_s0 = inlined_call_operand.vmem [shape: f32[2,1,18,18,4], index: 0, kind: input, shape index: {}]   ;;  %s4101_s1 = inlined_call_operand.vmem [shape: f32[128,128], index: 1, kind: input, shape index: {}]   ;;  %s4102_s2 = inlined_call_operand.vmem [shape: f32[1,128], index: 2, kind: input, shape index: {}]   ;;  %s4103_s3 = inlined_call_operand.vmem [shape: f32[2,1,16,16,128], index: 3, kind: output, shape index: {}]  }
   0x1   :  { %s2126_s14 = smov 0  }
   0x2 LB: > { %s25_s15 = sadd.s32 1, %s2088_s13  ;;  %p1919_p0 = scmp.ge.s32.totalorder %s2092_s14, 1  ;;  %s2092_s14 = sphi %s2126_s14, %s13_s14   ;;  %s2088_s13 = sphi %s2124_s13, %s4528_s13   ;;  %s2084_s12 = sphi %s2122_s12, %s4527_s12  }
   0x3   : > { %p27_p1 = scmp.ge.s32.totalorder %s25_s15, 2  ;;  %p157_p2 = scmp.lt.s32.totalorder %s2092_s14, 3 }
   0x5   : > { %s4530_s15 = smov (%p27_p1, %s25_s15), 0  ;;  %p158_p3 = pnand %p1919_p0, %p157_p2 }
   0x7   : > { %161 = sbr.rel (%p158_p3) target bundleno = 952 (0x3b8), region = 32 }
   0xc   : > { %p189_p4 = scmp.lt.s32.totalorder %s2084_s12, 1  ;;  %vm309_vm0 = vcmask 1046528   ;;  %s2094_s20 = smov 4   ;;  %vm486_vm1 = vcmask 1045504   ;;  %vm1265_vm2 = vcmask 31744   ;;  %vm1298_vm3 = vcmask 64512  }
   0xd   : > { %s2095_s21 = smov 8   ;;  %s2096_s22 = smov 12   ;;  %vm1331_vm4 = vcmask 97280   ;;  %vm1364_vm5 = vcmask 130048   ;;  %vm1397_vm6 = vcmask 162816   ;;  %vm1430_vm7 = vcmask 195584  }
   0xe   : > { %s4532_s12 = smov (!%p189_p4, %s2084_s12), 1  ;;  %s2097_s23 = smov 16   ;;  %vm1463_vm8 = vcmask 228352   ;;  %vm1496_vm9 = vcmask 261120   ;;  %vm1529_vm10 = vcmask 293888  }
   0xf   : > { %s2006_s16 = smul.u32 432, %s4532_s12  ;;  %s2098_s24 = smov 20  }
  0x10   : > { %s2099_s25 = smov 24   ;;  %s2100_s26 = smov 28  }
  0x11   : > { %s2146_s19 = scalar_lea.vmem %s4100_s0, %s2006_s16  ;;  %s2101_s27 = smov 32  }
  0x12   : > { %v2149_v0 = vld [vmem:[%s2146_s19 + $0x30] sm:$0xff]  ;;  %v2152_v1 = vld [vmem:[%s2146_s19 + $0x38] sm:$0xff]  ;;  %v2160_v5 = vld [vmem:[%s2146_s19 + $0x20] sm:$0xff] }
  0x13   : > { %v2155_v2 = vld [vmem:[%s2146_s19 + $0x18] sm:$0xff]  ;;  %v320_v3 = vrot.slane %v2149_v0, 1  ;;  %v321_v4 = vrot.slane %v2152_v1, 1  ;;  %v2164_v7 = vld [vmem:[%s2146_s19] sm:$0xff]  ;;  %v2167_v8 = vld [vmem:[%s2146_s19 + $0x8] sm:$0xff]  ;;  %v316_v9 = vrot.slane %v2160_v5, 1 }
  0x14   : > { %v315_v6 = vrot.slane %v2155_v2, 1  ;;  %v310_v10 = vrot.slane %v2164_v7, 1  ;;  %v311_v11 = vrot.slane %v2167_v8, 1  ;;  %v2173_v12 = vld [vmem:[%s2146_s19 + $0x40] sm:$0x3]  ;;  %v2207_v25 = vld [vmem:[%s2146_s19 + $0x68] sm:$0xff] }
  0x15   : > { %v2176_v13 = vsel %vm309_vm0, %v320_v3, %v321_v4  ;;  %v2179_v14 = vld [vmem:[%s2146_s19 + $0x28] sm:$0x3]  ;;  %v2182_v15 = vld [vmem:[%s2146_s19 + $0x10] sm:$0x3]  ;;  %v323_v18 = vrot.slane %v2173_v12, 1  ;;  %v2204_v24 = vld [vmem:[%s2146_s19 + $0x60] sm:$0xff] }
  0x16   : > { %398 = vrot.lane.b32.xlu2 %v2176_v13, %s2094_s20  ;;  %v2187_v16 = vsel %vm309_vm0, %v315_v6, %v316_v9  ;;  %v312_v17 = vsel %vm309_vm0, %v310_v10, %v311_v11  ;;  %v318_v19 = vrot.slane %v2179_v14, 1  ;;  %v313_v20 = vrot.slane %v2182_v15, 1  ;;  %v2210_v26 = vld [vmem:[%s2146_s19 + $0x50] sm:$0xff]  ;;  %v2213_v27 = vld [vmem:[%s2146_s19 + $0x58] sm:$0x3]  ;;  %v2216_v28 = vld [vmem:[%s2146_s19 + $0x48] sm:$0xff] }
  0x17   : > { %394 = vrot.lane.b32.xlu1 %v2187_v16, %s2094_s20  ;;  %390 = vrot.lane.b32.xlu0 %v312_v17, %s2094_s20  ;;  %v2197_v21 = vsel %vm309_vm0, %v321_v4, %v323_v18  ;;  %v330_v29 = vrot.slane %v2204_v24, 1  ;;  %v331_v30 = vrot.slane %v2207_v25, 1  ;;  %v326_v31 = vrot.slane %v2210_v26, 1  ;;  %v2238_v37 = vld [vmem:[%s2146_s19 + $0x80] sm:$0xff]  ;;  %v2241_v38 = vld [vmem:[%s2146_s19 + $0x88] sm:$0x3] }
  0x18   : > { %4194 = vst [vmem:[#allocation2_spill] sm:$0xff] %v2197_v21  ;;  %v2200_v22 = vsel %vm309_vm0, %v316_v9, %v318_v19  ;;  %v314_v23 = vsel %vm309_vm0, %v311_v11, %v313_v20  ;;  %v328_v32 = vrot.slane %v2213_v27, 1  ;;  %v325_v33 = vrot.slane %v2216_v28, 1  ;;  %v2244_v39 = vld [vmem:[%s2146_s19 + $0x78] sm:$0xff]  ;;  %v2247_v40 = vld [vmem:[%s2146_s19 + $0x70] sm:$0x3] }
  0x19   : > { %v2229_v34 = vsel %vm309_vm0, %v330_v29, %v331_v30  ;;  %v336_v41 = vrot.slane %v2238_v37, 1  ;;  %v338_v42 = vrot.slane %v2241_v38, 1  ;;  %v335_v43 = vrot.slane %v2244_v39, 1  ;;  %v2269_v48 = vld [vmem:[%s2146_s19 + $0xa8] sm:$0xff]  ;;  %v2272_v49 = vld [vmem:[%s2146_s19 + $0xb0] sm:$0xff]  ;;  %v2275_v50 = vld [vmem:[%s2146_s19 + $0x98] sm:$0xff] }
  0x1a   : > { %4195 = vst [vmem:[#allocation3_spill] sm:$0xff] %v2229_v34  ;;  %v2232_v35 = vsel %vm309_vm0, %v326_v31, %v328_v32  ;;  %v2235_v36 = vsel %vm309_vm0, %v325_v33, %v326_v31  ;;  %v333_v44 = vrot.slane %v2247_v40, 1  ;;  %v2278_v51 = vld [vmem:[%s2146_s19 + $0xa0] sm:$0x3]  ;;  %v2281_v52 = vld [vmem:[%s2146_s19 + $0x90] sm:$0xff]  ;;  %v345_v53 = vrot.slane %v2269_v48, 1 }
  0x1b   : > { %4196 = vst [vmem:[#allocation4_spill] sm:$0xff] %v2232_v35  ;;  %v2260_v45 = vsel %vm309_vm0, %v336_v41, %v338_v42  ;;  %v2263_v46 = vsel %vm309_vm0, %v335_v43, %v336_v41  ;;  %v346_v54 = vrot.slane %v2272_v49, 1  ;;  %v341_v55 = vrot.slane %v2275_v50, 1  ;;  %v2304_v61 = vld [vmem:[%s2146_s19 + $0xc8] sm:$0xff]  ;;  %v2307_v62 = vld [vmem:[%s2146_s19 + $0xd0] sm:$0x3] }
  0x1c   : > { %4197 = vst [vmem:[#allocation5_spill] sm:$0xff] %v2235_v36  ;;  %v2266_v47 = vsel %vm309_vm0, %v331_v30, %v333_v44  ;;  %v343_v56 = vrot.slane %v2278_v51, 1  ;;  %v340_v57 = vrot.slane %v2281_v52, 1  ;;  %v2310_v63 = vld [vmem:[%s2146_s19 + $0xc0] sm:$0xff]  ;;  %v2313_v3 = vld [vmem:[%s2146_s19 + $0xb8] sm:$0x3] }
  0x1d   : > { %4198 = vst [vmem:[#allocation6_spill] sm:$0xff] %v2260_v45  ;;  %v2295_v58 = vsel %vm309_vm0, %v345_v53, %v346_v54  ;;  %v351_v4 = vrot.slane %v2304_v61, 1  ;;  %v353_v6 = vrot.slane %v2307_v62, 1  ;;  %v350_v9 = vrot.slane %v2310_v63, 1  ;;  %v2335_v19 = vld [vmem:[%s2146_s19 + $0xf0] sm:$0xff]  ;;  %v2338_v20 = vld [vmem:[%s2146_s19 + $0xf8] sm:$0xff] }
  0x1e   : > { %400 = vrot.lane.b32.xlu2 %v2197_v21, %s2094_s20  ;;  %4199 = vst [vmem:[#allocation7_spill] sm:$0xff] %v2263_v46  ;;  %v2298_v59 = vsel %vm309_vm0, %v341_v55, %v343_v56  ;;  %v2301_v60 = vsel %vm309_vm0, %v340_v57, %v341_v55  ;;  %v348_v10 = vrot.slane %v2313_v3, 1  ;;  %v2344_v29 = vld [vmem:[%s2146_s19 + $0xe8] sm:$0x3]  ;;  %v2347_v30 = vld [vmem:[%s2146_s19 + $0xd8] sm:$0xff]  ;;  %v360_v31 = vrot.slane %v2335_v19, 1 }
  0x1f   : > { %396 = vrot.lane.b32.xlu1 %v2200_v22, %s2094_s20  ;;  %392 = vrot.lane.b32.xlu0 %v314_v23, %s2094_s20  ;;  %4200 = vst [vmem:[#allocation8_spill] sm:$0xff] %v2266_v47  ;;  %v2326_v11 = vsel %vm309_vm0, %v351_v4, %v353_v6  ;;  %v2329_v17 = vsel %vm309_vm0, %v350_v9, %v351_v4  ;;  %v2341_v23 = vld [vmem:[%s2146_s19 + $0xe0] sm:$0xff]  ;;  %v361_v32 = vrot.slane %v2338_v20, 1  ;;  %v358_v41 = vrot.slane %v2344_v29, 1  ;;  %v2373_v55 = vld [vmem:[%s2146_s19 + $0x118] sm:$0x3] }
  0x20   : > { %4201 = vst [vmem:[#allocation9_spill] sm:$0xff] %v2295_v58  ;;  %v2332_v18 = vsel %vm309_vm0, %v346_v54, %v348_v10  ;;  %v356_v33 = vrot.slane %v2341_v23, 1  ;;  %v355_v42 = vrot.slane %v2347_v30, 1  ;;  %v2370_v54 = vld [vmem:[%s2146_s19 + $0x110] sm:$0xff]  ;;  %v2376_v56 = vld [vmem:[%s2146_s19 + $0x108] sm:$0xff]  ;;  %v368_v6 = vrot.slane %v2373_v55, 1 }
  0x21   : > { %4202 = vst [vmem:[#allocation10_spill] sm:$0xff] %v2298_v59  ;;  %v2361_v43 = vsel %vm309_vm0, %v360_v31, %v361_v32  ;;  %v2379_v57 = vld [vmem:[%s2146_s19 + $0x100] sm:$0x3]  ;;  %v366_v4 = vrot.slane %v2370_v54, 1  ;;  %v365_v9 = vrot.slane %v2376_v56, 1 }
  0x22   : > { %4203 = vst [vmem:[#allocation11_spill] sm:$0xff] %v2301_v60  ;;  %v2364_v44 = vsel %vm309_vm0, %v356_v33, %v358_v41  ;;  %v2367_v53 = vsel %vm309_vm0, %v355_v42, %v356_v33  ;;  %v363_v10 = vrot.slane %v2379_v57, 1  ;;  %v2401_v42 = vld [vmem:[%s2146_s19 + $0x138] sm:$0xff] }
  0x23   : > { %4204 = vst [vmem:[#allocation12_spill] sm:$0xff] %v2326_v11  ;;  %v2392_v31 = vsel %vm309_vm0, %v366_v4, %v368_v6  ;;  %v2395_v33 = vsel %vm309_vm0, %v365_v9, %v366_v4  ;;  %v2413_v6 = vld [vmem:[%s2146_s19 + $0x120] sm:$0xff] }
  0x24   : > { %4205 = vst [vmem:[#allocation13_spill] sm:$0xff] %v2329_v17  ;;  %v2398_v41 = vsel %vm309_vm0, %v361_v32, %v363_v10  ;;  %v375_v32 = vrot.slane %v2401_v42, 1 }
  0x25   : > { %4206 = vst [vmem:[#allocation14_spill] sm:$0xff] %v2332_v18 }
  0x26   : > { %406 = vrot.lane.b32.xlu2 %v2229_v34, %s2094_s20  ;;  %4207 = vst [vmem:[#allocation15_spill] sm:$0xff] %v2361_v43  ;;  %v2473_v34 = vld [vmem:[%s2146_s19 + $0x168] sm:$0xff] }
  0x27   : > { %404 = vrot.lane.b32.xlu1 %v2232_v35, %s2094_s20  ;;  %402 = vrot.lane.b32.xlu0 %v2235_v36, %s2094_s20  ;;  %4208 = vst [vmem:[#allocation16_spill] sm:$0xff] %v2364_v44 }
  0x28   : > { %4209 = vst [vmem:[#allocation17_spill] sm:$0xff] %v2367_v53 }
  0x29   : > { %4210 = vst [vmem:[#allocation18_spill] sm:$0xff] %v2392_v31 }
  0x2a   : > { %4211 = vst [vmem:[#allocation19_spill] sm:$0xff] %v2395_v33 }
  0x2b   : > { %4212 = vst [vmem:[#allocation20_spill] sm:$0xff] %v2398_v41 }
  0x2c   : > { %4220 = vst [vmem:[#allocation28_spill] sm:$0xff] %v2473_v34 }
  0x2e   : > { %412 = vrot.lane.b32.xlu2 %v2260_v45, %s2094_s20  ;;  %v2445_v45 = vld [vmem:[%s2146_s19 + $0x148] sm:$0x3] }
  0x2f   : > { %410 = vrot.lane.b32.xlu1 %v2263_v46, %s2094_s20  ;;  %408 = vrot.lane.b32.xlu0 %v2266_v47, %s2094_s20 }
  0x36   : > { %418 = vrot.lane.b32.xlu2 %v2295_v58, %s2094_s20 }
  0x37   : > { %416 = vrot.lane.b32.xlu1 %v2298_v59, %s2094_s20  ;;  %414 = vrot.lane.b32.xlu0 %v2301_v60, %s2094_s20 }
  0x3e   : > { %424 = vrot.lane.b32.xlu2 %v2326_v11, %s2094_s20  ;;  %v2407_v11 = vld [vmem:[%s2146_s19 + $0x128] sm:$0xff] }
  0x3f   : > { %422 = vrot.lane.b32.xlu1 %v2329_v17, %s2094_s20  ;;  %420 = vrot.lane.b32.xlu0 %v2332_v18, %s2094_s20  ;;  %v371_v9 = vrot.slane %v2407_v11, 1  ;;  %v2439_v18 = vld [vmem:[%s2146_s19 + $0x160] sm:$0x3]  ;;  %v2442_v17 = vld [vmem:[%s2146_s19 + $0x150] sm:$0xff] }
  0x46   : > { %430 = vrot.lane.b32.xlu2 %v2361_v43, %s2094_s20  ;;  %v2404_v43 = vld [vmem:[%s2146_s19 + $0x140] sm:$0xff] }
  0x47   : > { %428 = vrot.lane.b32.xlu1 %v2364_v44, %s2094_s20  ;;  %426 = vrot.lane.b32.xlu0 %v2367_v53, %s2094_s20  ;;  %4213 = vst [vmem:[#allocation21_spill] sm:$0xff] %v2404_v43  ;;  %v2410_v53 = vld [vmem:[%s2146_s19 + $0x130] sm:$0x3]  ;;  %v376_v4 = vrot.slane %v2404_v43, 1  ;;  %v370_v44 = vrot.slane %v2413_v6, 1 }
  0x48   : > { %v373_v10 = vrot.slane %v2410_v53, 1 }
  0x49   : > { %v2427_v58 = vsel %vm309_vm0, %v375_v32, %v376_v4  ;;  %v383_v32 = vrot.slane %v2439_v18, 1 }
  0x4a   : > { %4214 = vst [vmem:[#allocation22_spill] sm:$0xff] %v2427_v58 }
  0x4e   : > { %436 = vrot.lane.b32.xlu2 %v2392_v31, %s2094_s20  ;;  %v2430_v31 = vsel %vm309_vm0, %v371_v9, %v373_v10  ;;  %v378_v10 = vrot.slane %v2445_v45, 1 }
  0x4f   : > { %434 = vrot.lane.b32.xlu1 %v2395_v33, %s2094_s20  ;;  %432 = vrot.lane.b32.xlu0 %v2398_v41, %s2094_s20  ;;  %4215 = vst [vmem:[#allocation23_spill] sm:$0xff] %v2430_v31  ;;  %v2433_v33 = vsel %vm309_vm0, %v370_v44, %v371_v9  ;;  %v2436_v41 = vld [vmem:[%s2146_s19 + $0x158] sm:$0xff]  ;;  %v380_v9 = vrot.slane %v2442_v17, 1 }
  0x50   : > { %4216 = vst [vmem:[#allocation24_spill] sm:$0xff] %v2433_v33  ;;  %v381_v44 = vrot.slane %v2436_v41, 1 }
  0x52   : > { %v2458_v60 = vsel %vm309_vm0, %v381_v44, %v383_v32  ;;  %v2461_v59 = vsel %vm309_vm0, %v380_v9, %v381_v44  ;;  %v487_v44 = vrot.slane %v2164_v7, 2  ;;  %v493_v7 = vrot.slane %v2160_v5, 2 }
  0x53   : > { %4217 = vst [vmem:[#allocation25_spill] sm:$0xff] %v2458_v60 }
  0x54   : > { %4218 = vst [vmem:[#allocation26_spill] sm:$0xff] %v2461_v59 }
  0x56   : > { %442 = vrot.lane.b32.xlu2 %v2427_v58, %s2094_s20  ;;  %v2464_v58 = vsel %vm309_vm0, %v376_v4, %v378_v10  ;;  %v488_v4 = vrot.slane %v2167_v8, 2  ;;  %v385_v10 = vrot.slane %v2473_v34, 1  ;;  %v495_v8 = vrot.slane %v2179_v14, 2 }
  0x57   : > { %440 = vrot.lane.b32.xlu1 %v2430_v31, %s2094_s20  ;;  %438 = vrot.lane.b32.xlu0 %v2433_v33, %s2094_s20  ;;  %4219 = vst [vmem:[#allocation27_spill] sm:$0xff] %v2464_v58  ;;  %v2467_v31 = vld [vmem:[%s2146_s19 + $0x170] sm:$0xff]  ;;  %v2470_v33 = vld [vmem:[%s2146_s19 + $0x178] sm:$0x3]  ;;  %v502_v14 = vrot.slane %v2216_v28, 2 }
  0x58   : > { %v386_v32 = vrot.slane %v2467_v31, 1  ;;  %v388_v9 = vrot.slane %v2470_v33, 1  ;;  %v489_v47 = vsel %vm486_vm1, %v487_v44, %v488_v4  ;;  %v492_v44 = vrot.slane %v2155_v2, 2 }
  0x5e   : > { %448 = vrot.lane.b32.xlu2 %v2458_v60, %s2094_s20  ;;  %v2488_v60 = vsel %vm309_vm0, %v386_v32, %v388_v9  ;;  %v490_v9 = vrot.slane %v2182_v15, 2  ;;  %v503_v15 = vrot.slane %v2210_v26, 2 }
  0x5f   : > { %446 = vrot.lane.b32.xlu1 %v2461_v59, %s2094_s20  ;;  %444 = vrot.lane.b32.xlu0 %v2464_v58, %s2094_s20  ;;  %4221 = vst [vmem:[#allocation29_spill] sm:$0xff] %v2488_v60  ;;  %v2491_v59 = vsel %vm309_vm0, %v385_v10, %v386_v32  ;;  %v2503_v32 = vsel %vm486_vm1, %v493_v7, %v495_v8  ;;  %v498_v8 = vrot.slane %v2152_v1, 2 }
  0x60   : > { %4222 = vst [vmem:[#allocation30_spill] sm:$0xff] %v2491_v59  ;;  %v2506_v10 = vsel %vm486_vm1, %v492_v44, %v493_v7  ;;  %v500_v7 = vrot.slane %v2173_v12, 2  ;;  %v2522_v44 = vsel %vm486_vm1, %v502_v14, %v503_v15  ;;  %v508_v12 = vrot.slane %v2207_v25, 2 }
  0x61   : > { %4223 = vst [vmem:[#allocation31_spill] sm:$0xff] %v2503_v32  ;;  %v510_v14 = vrot.slane %v2247_v40, 2  ;;  %v518_v40 = vrot.slane %v2275_v50, 2 }
  0x62   : > { %4225 = vst [vmem:[#allocation33_spill] sm:$0xff] %v2522_v44 }
  0x66   : > { %567 = vrot.lane.b32.xlu2 %v489_v47, %s2095_s21  ;;  %v491_v47 = vsel %vm486_vm1, %v488_v4, %v490_v9  ;;  %v497_v4 = vrot.slane %v2149_v0, 2  ;;  %v2525_v9 = vsel %vm486_vm1, %v498_v8, %v500_v7  ;;  %v507_v7 = vrot.slane %v2204_v24, 2 }
  0x67   : > { %452 = vrot.lane.b32.xlu1 %v2488_v60, %s2094_s20  ;;  %450 = vrot.lane.b32.xlu0 %v2491_v59, %s2094_s20  ;;  %4226 = vst [vmem:[#allocation34_spill] sm:$0xff] %v2525_v9 }
  0x6e   : > { %573 = vrot.lane.b32.xlu2 %v2503_v32, %s2095_s21 }
  0x6f   : > { %571 = vrot.lane.b32.xlu1 %v2506_v10, %s2095_s21  ;;  %569 = vrot.lane.b32.xlu0 %v491_v47, %s2095_s21  ;;  %v2528_v47 = vsel %vm486_vm1, %v497_v4, %v498_v8  ;;  %v505_v8 = vrot.slane %v2213_v27, 2  ;;  %v2543_v4 = vsel %vm486_vm1, %v508_v12, %v510_v14  ;;  %v517_v27 = vrot.slane %v2281_v52, 2 }
  0x70   : > { %v2516_v59 = vpop.permute.xlu2 %398  ;;  %4228 = vst [vmem:[#allocation36_spill] sm:$0xff] %v2543_v4 }
  0x71   : > { %4224 = vst [vmem:[#allocation32_spill] sm:$0xff] %v2516_v59  ;;  %v2549_v32 = vsel %vm486_vm1, %v503_v15, %v505_v8  ;;  %v515_v15 = vrot.slane %v2241_v38, 2  ;;  %v2565_v8 = vsel %vm486_vm1, %v517_v27, %v518_v40  ;;  %v523_v38 = vrot.slane %v2272_v49, 2 }
  0x72   : > { %4230 = vst [vmem:[#allocation38_spill] sm:$0xff] %v2549_v32  ;;  %v525_v27 = vrot.slane %v2313_v3, 2  ;;  %v533_v3 = vrot.slane %v2341_v23, 2 }
  0x73   : > { %4232 = vst [vmem:[#allocation40_spill] sm:$0xff] %v2565_v8 }
  0x76   : > { %579 = vrot.lane.b32.xlu2 %v2522_v44, %s2095_s21  ;;  %v2546_v44 = vsel %vm486_vm1, %v507_v7, %v508_v12  ;;  %v513_v12 = vrot.slane %v2238_v37, 2  ;;  %v512_v7 = vrot.slane %v2244_v39, 2 }
  0x77   : > { %577 = vrot.lane.b32.xlu1 %v2525_v9, %s2095_s21  ;;  %575 = vrot.lane.b32.xlu0 %v2528_v47, %s2095_s21  ;;  %4229 = vst [vmem:[#allocation37_spill] sm:$0xff] %v2546_v44 }
  0x78   : > { %v2538_v59 = vpop.permute.xlu2 %400 }
  0x79   : > { %4227 = vst [vmem:[#allocation35_spill] sm:$0xff] %v2538_v59  ;;  %v2568_v59 = vsel %vm486_vm1, %v513_v12, %v515_v15  ;;  %v522_v15 = vrot.slane %v2269_v48, 2 }
  0x7a   : > { %4233 = vst [vmem:[#allocation41_spill] sm:$0xff] %v2568_v59 }
  0x7e   : > { %585 = vrot.lane.b32.xlu2 %v2543_v4, %s2095_s21  ;;  %v2571_v4 = vsel %vm486_vm1, %v512_v7, %v513_v12  ;;  %v520_v12 = vrot.slane %v2278_v51, 2  ;;  %v532_v51 = vrot.slane %v2347_v30, 2 }
  0x7f   : > { %583 = vrot.lane.b32.xlu1 %v2546_v44, %s2095_s21  ;;  %581 = vrot.lane.b32.xlu0 %v2549_v32, %s2095_s21  ;;  %4234 = vst [vmem:[#allocation42_spill] sm:$0xff] %v2571_v4 }
  0x80   : > { %v2559_v14 = vpop.permute.xlu2 %406 }
  0x81   : > { %4231 = vst [vmem:[#allocation39_spill] sm:$0xff] %v2559_v14 }
  0x86   : > { %591 = vrot.lane.b32.xlu2 %v2565_v8, %s2095_s21  ;;  %v2590_v8 = vsel %vm486_vm1, %v523_v38, %v525_v27 }
  0x87   : > { %589 = vrot.lane.b32.xlu1 %v2568_v59, %s2095_s21  ;;  %587 = vrot.lane.b32.xlu0 %v2571_v4, %s2095_s21  ;;  %4238 = vst [vmem:[#allocation46_spill] sm:$0xff] %v2590_v8  ;;  %v2593_v59 = vsel %vm486_vm1, %v522_v15, %v523_v38  ;;  %v2596_v4 = vsel %vm486_vm1, %v518_v40, %v520_v12  ;;  %v528_v38 = vrot.slane %v2304_v61, 2  ;;  %v530_v40 = vrot.slane %v2307_v62, 2 }
  0x88   : > { %v2581_v14 = vpop.permute.xlu2 %412  ;;  %4239 = vst [vmem:[#allocation47_spill] sm:$0xff] %v2593_v59  ;;  %v527_v15 = vrot.slane %v2310_v63, 2  ;;  %v538_v62 = vrot.slane %v2338_v20, 2 }
  0x89   : > { %4235 = vst [vmem:[#allocation43_spill] sm:$0xff] %v2581_v14  ;;  %v2585_v7 = vpop.permute.xlu1 %394  ;;  %v2587_v32 = vpop.permute.xlu0 %390 }
  0x8a   : > { %4236 = vst [vmem:[#allocation44_spill] sm:$0xff] %v2585_v7  ;;  %v2616_v7 = vsel %vm486_vm1, %v532_v51, %v533_v3  ;;  %v540_v51 = vrot.slane %v2379_v57, 2  ;;  %v548_v57 = vrot.slane %v2407_v11, 2 }
  0x8b   : > { %4237 = vst [vmem:[#allocation45_spill] sm:$0xff] %v2587_v32  ;;  %v2619_v32 = vsel %vm486_vm1, %v528_v38, %v530_v40  ;;  %v537_v40 = vrot.slane %v2335_v19, 2 }
  0x8c   : > { %4240 = vst [vmem:[#allocation48_spill] sm:$0xff] %v2596_v4 }
  0x8d   : > { %4244 = vst [vmem:[#allocation52_spill] sm:$0xff] %v2616_v7 }
  0x8e   : > { %597 = vrot.lane.b32.xlu2 %v2590_v8, %s2095_s21  ;;  %4245 = vst [vmem:[#allocation53_spill] sm:$0xff] %v2619_v32  ;;  %v2622_v8 = vsel %vm486_vm1, %v527_v15, %v528_v38  ;;  %v535_v38 = vrot.slane %v2344_v29, 2  ;;  %v547_v29 = vrot.slane %v2413_v6, 2 }
  0x8f   : > { %595 = vrot.lane.b32.xlu1 %v2593_v59, %s2095_s21  ;;  %593 = vrot.lane.b32.xlu0 %v2596_v4, %s2095_s21  ;;  %4246 = vst [vmem:[#allocation54_spill] sm:$0xff] %v2622_v8 }
  0x90   : > { %v2606_v27 = vpop.permute.xlu2 %418 }
  0x91   : > { %4241 = vst [vmem:[#allocation49_spill] sm:$0xff] %v2606_v27  ;;  %v2611_v12 = vpop.permute.xlu1 %396  ;;  %v2613_v14 = vpop.permute.xlu0 %392  ;;  %v2641_v27 = vsel %vm486_vm1, %v538_v62, %v540_v51 }
  0x92   : > { %4242 = vst [vmem:[#allocation50_spill] sm:$0xff] %v2611_v12 }
  0x93   : > { %4243 = vst [vmem:[#allocation51_spill] sm:$0xff] %v2613_v14 }
  0x94   : > { %4250 = vst [vmem:[#allocation58_spill] sm:$0xff] %v2641_v27 }
  0x96   : > { %603 = vrot.lane.b32.xlu2 %v2616_v7, %s2095_s21  ;;  %v2644_v7 = vsel %vm486_vm1, %v537_v40, %v538_v62  ;;  %v543_v62 = vrot.slane %v2370_v54, 2  ;;  %v542_v40 = vrot.slane %v2376_v56, 2 }
  0x97   : > { %601 = vrot.lane.b32.xlu1 %v2619_v32, %s2095_s21  ;;  %599 = vrot.lane.b32.xlu0 %v2622_v8, %s2095_s21  ;;  %v2647_v8 = vsel %vm486_vm1, %v533_v3, %v535_v38  ;;  %v545_v3 = vrot.slane %v2373_v55, 2  ;;  %v553_v55 = vrot.slane %v2404_v43, 2 }
  0x98   : > { %v2632_v12 = vpop.permute.xlu2 %424  ;;  %4251 = vst [vmem:[#allocation59_spill] sm:$0xff] %v2647_v8 }
  0x99   : > { %4247 = vst [vmem:[#allocation55_spill] sm:$0xff] %v2632_v12  ;;  %v2636_v15 = vpop.permute.xlu1 %404  ;;  %v2638_v14 = vpop.permute.xlu0 %402  ;;  %v2670_v12 = vsel %vm486_vm1, %v543_v62, %v545_v3  ;;  %v552_v3 = vrot.slane %v2401_v42, 2 }
  0x9a   : > { %4248 = vst [vmem:[#allocation56_spill] sm:$0xff] %v2636_v15  ;;  %v2667_v15 = vsel %vm486_vm1, %v547_v29, %v548_v57  ;;  %v555_v29 = vrot.slane %v2445_v45, 2  ;;  %v562_v45 = vrot.slane %v2473_v34, 2 }
  0x9b   : > { %4249 = vst [vmem:[#allocation57_spill] sm:$0xff] %v2638_v14 }
  0x9c   : > { %4255 = vst [vmem:[#allocation63_spill] sm:$0xff] %v2667_v15 }
  0x9d   : > { %4256 = vst [vmem:[#allocation64_spill] sm:$0xff] %v2670_v12 }
  0x9e   : > { %609 = vrot.lane.b32.xlu2 %v2641_v27, %s2095_s21  ;;  %v2673_v27 = vsel %vm486_vm1, %v542_v40, %v543_v62  ;;  %v550_v62 = vrot.slane %v2410_v53, 2  ;;  %v563_v53 = vrot.slane %v2467_v31, 2 }
  0x9f   : > { %607 = vrot.lane.b32.xlu1 %v2644_v7, %s2095_s21  ;;  %605 = vrot.lane.b32.xlu0 %v2647_v8, %s2095_s21  ;;  %4257 = vst [vmem:[#allocation65_spill] sm:$0xff] %v2673_v27 }
  0xa0   : > { %v2657_v51 = vpop.permute.xlu2 %430 }
  0xa1   : > { %4252 = vst [vmem:[#allocation60_spill] sm:$0xff] %v2657_v51  ;;  %v2662_v38 = vpop.permute.xlu1 %410  ;;  %v2664_v14 = vpop.permute.xlu0 %408  ;;  %v2692_v51 = vsel %vm486_vm1, %v553_v55, %v555_v29 }
  0xa2   : > { %4253 = vst [vmem:[#allocation61_spill] sm:$0xff] %v2662_v38 }
  0xa3   : > { %4254 = vst [vmem:[#allocation62_spill] sm:$0xff] %v2664_v14 }
  0xa4   : > { %4261 = vst [vmem:[#allocation69_spill] sm:$0xff] %v2692_v51 }
  0xa6   : > { %615 = vrot.lane.b32.xlu2 %v2667_v15, %s2095_s21  ;;  %v2695_v15 = vsel %vm486_vm1, %v552_v3, %v553_v55  ;;  %v558_v55 = vrot.slane %v2436_v41, 2  ;;  %v557_v3 = vrot.slane %v2442_v17, 2 }
  0xa7   : > { %613 = vrot.lane.b32.xlu1 %v2670_v12, %s2095_s21  ;;  %611 = vrot.lane.b32.xlu0 %v2673_v27, %s2095_s21  ;;  %4262 = vst [vmem:[#allocation70_spill] sm:$0xff] %v2695_v15  ;;  %v2698_v27 = vsel %vm486_vm1, %v548_v57, %v550_v62  ;;  %v560_v57 = vrot.slane %v2439_v18, 2 }
  0xa8   : > { %v2683_v14 = vpop.permute.xlu2 %436  ;;  %4263 = vst [vmem:[#allocation71_spill] sm:$0xff] %v2698_v27 }
  0xa9   : > { %4258 = vst [vmem:[#allocation66_spill] sm:$0xff] %v2683_v14  ;;  %v2687_v40 = vpop.permute.xlu1 %416  ;;  %v2689_v38 = vpop.permute.xlu0 %414  ;;  %v2718_v14 = vsel %vm486_vm1, %v562_v45, %v563_v53  ;;  %v565_v45 = vrot.slane %v2470_v33, 2 }
  0xaa   : > { %4259 = vst [vmem:[#allocation67_spill] sm:$0xff] %v2687_v40  ;;  %v2721_v40 = vsel %vm486_vm1, %v558_v55, %v560_v57 }
  0xab   : > { %4260 = vst [vmem:[#allocation68_spill] sm:$0xff] %v2689_v38 }
  0xae   : > { %621 = vrot.lane.b32.xlu2 %v2692_v51, %s2095_s21  ;;  %v2724_v51 = vsel %vm486_vm1, %v557_v3, %v558_v55  ;;  %v2740_v55 = vsel %vm486_vm1, %v563_v53, %v565_v45 }
  0xaf   : > { %619 = vrot.lane.b32.xlu1 %v2695_v15, %s2095_s21  ;;  %617 = vrot.lane.b32.xlu0 %v2698_v27, %s2095_s21 }
  0xb0   : > { %v2708_v29 = vpop.permute.xlu2 %442 }
  0xb1   : > { %4264 = vst [vmem:[#allocation72_spill] sm:$0xff] %v2708_v29  ;;  %v2713_v62 = vpop.permute.xlu1 %422  ;;  %v2715_v38 = vpop.permute.xlu0 %420 }
  0xb2   : > { %4265 = vst [vmem:[#allocation73_spill] sm:$0xff] %v2713_v62 }
  0xb6   : > { %627 = vrot.lane.b32.xlu2 %v2718_v14, %s2095_s21 }
  0xb7   : > { %625 = vrot.lane.b32.xlu1 %v2721_v40, %s2095_s21  ;;  %623 = vrot.lane.b32.xlu0 %v2724_v51, %s2095_s21 }
  0xb8   : > { %v2732_v18 = vpop.permute.xlu2 %448 }
  0xb9   : > { %4266 = vst [vmem:[#allocation74_spill] sm:$0xff] %v2732_v18  ;;  %v2735_v29 = vpop.permute.xlu1 %428  ;;  %v2737_v57 = vpop.permute.xlu0 %426 }
  0xba   : > { %4267 = vst [vmem:[#allocation75_spill] sm:$0xff] %v2735_v29 }
  0xbe   : > { %667 = vrot.lane.b32.xlu2 %v2160_v5, %s2096_s22 }
  0xbf   : > { %665 = vrot.lane.b32.xlu1 %v2155_v2, %s2096_s22  ;;  %629 = vrot.lane.b32.xlu0 %v2740_v55, %s2095_s21 }
  0xc0   : > { %v2748_v3 = vpop.permute.xlu2 %567 }
  0xc1   : > { %4268 = vst [vmem:[#allocation76_spill] sm:$0xff] %v2748_v3  ;;  %v2750_v33 = vpop.permute.xlu1 %434  ;;  %v2752_v18 = vpop.permute.xlu0 %432 }
  0xc2   : > { %4269 = vst [vmem:[#allocation77_spill] sm:$0xff] %v2750_v33 }
  0xc6   : > { %673 = vrot.lane.b32.xlu2 %v2216_v28, %s2096_s22 }
  0xc7   : > { %671 = vrot.lane.b32.xlu1 %v2152_v1, %s2096_s22  ;;  %669 = vrot.lane.b32.xlu0 %v2149_v0, %s2096_s22 }
  0xc8   : > { %v2760_v5 = vpop.permute.xlu2 %573 }
  0xc9   : > { %4270 = vst [vmem:[#allocation78_spill] sm:$0xff] %v2760_v5  ;;  %v2762_v2 = vpop.permute.xlu1 %440  ;;  %v2764_v53 = vpop.permute.xlu0 %438 }
  0xca   : > { %4271 = vst [vmem:[#allocation79_spill] sm:$0xff] %v2762_v2 }
  0xce   : > { %679 = vrot.lane.b32.xlu2 %v2207_v25, %s2096_s22 }
  0xcf   : > { %677 = vrot.lane.b32.xlu1 %v2204_v24, %s2096_s22  ;;  %675 = vrot.lane.b32.xlu0 %v2210_v26, %s2096_s22 }
  0xd0   : > { %v2772_v45 = vpop.permute.xlu2 %579 }
  0xd1   : > { %4272 = vst [vmem:[#allocation80_spill] sm:$0xff] %v2772_v45  ;;  %v2774_v3 = vpop.permute.xlu1 %446  ;;  %v2776_v33 = vpop.permute.xlu0 %444 }
  0xd2   : > { %4273 = vst [vmem:[#allocation81_spill] sm:$0xff] %v2774_v3 }
  0xd3   : > { %4274 = vst [vmem:[#allocation82_spill] sm:$0xff] %v2776_v33 }
  0xd6   : > { %685 = vrot.lane.b32.xlu2 %v2281_v52, %s2096_s22 }
  0xd7   : > { %683 = vrot.lane.b32.xlu1 %v2238_v37, %s2096_s22  ;;  %681 = vrot.lane.b32.xlu0 %v2244_v39, %s2096_s22 }
  0xd8   : > { %v2784_v5 = vpop.permute.xlu2 %585 }
  0xd9   : > { %4275 = vst [vmem:[#allocation83_spill] sm:$0xff] %v2784_v5  ;;  %v2786_v2 = vpop.permute.xlu1 %452  ;;  %v2788_v29 = vpop.permute.xlu0 %450 }
  0xda   : > { %4276 = vst [vmem:[#allocation84_spill] sm:$0xff] %v2786_v2 }
  0xdb   : > { %4277 = vst [vmem:[#allocation85_spill] sm:$0xff] %v2788_v29 }
  0xde   : > { %691 = vrot.lane.b32.xlu2 %v2272_v49, %s2096_s22 }
  0xdf   : > { %689 = vrot.lane.b32.xlu1 %v2269_v48, %s2096_s22  ;;  %687 = vrot.lane.b32.xlu0 %v2275_v50, %s2096_s22 }
  0xe0   : > { %v2796_v45 = vpop.permute.xlu2 %591 }
  0xe1   : > { %4278 = vst [vmem:[#allocation86_spill] sm:$0xff] %v2796_v45  ;;  %v2798_v3 = vpop.permute.xlu1 %571  ;;  %v2800_v62 = vpop.permute.xlu0 %569 }
  0xe2   : > { %4279 = vst [vmem:[#allocation87_spill] sm:$0xff] %v2798_v3 }
  0xe3   : > { %4280 = vst [vmem:[#allocation88_spill] sm:$0xff] %v2800_v62 }
  0xe6   : > { %697 = vrot.lane.b32.xlu2 %v2347_v30, %s2096_s22 }
  0xe7   : > { %695 = vrot.lane.b32.xlu1 %v2304_v61, %s2096_s22  ;;  %693 = vrot.lane.b32.xlu0 %v2310_v63, %s2096_s22 }
  0xe8   : > { %v2808_v5 = vpop.permute.xlu2 %597 }
  0xe9   : > { %v2810_v2 = vpop.permute.xlu1 %577  ;;  %v2812_v29 = vpop.permute.xlu0 %575 }
  0xea   : > { %4281 = vst [vmem:[#allocation89_spill] sm:$0xff] %v2810_v2 }
  0xeb   : > { %4282 = vst [vmem:[#allocation90_spill] sm:$0xff] %v2812_v29 }
  0xee   : > { %703 = vrot.lane.b32.xlu2 %v2338_v20, %s2096_s22 }
  0xef   : > { %701 = vrot.lane.b32.xlu1 %v2335_v19, %s2096_s22  ;;  %699 = vrot.lane.b32.xlu0 %v2341_v23, %s2096_s22 }
  0xf0   : > { %v2820_v45 = vpop.permute.xlu2 %603 }
  0xf1   : > { %v2822_v3 = vpop.permute.xlu1 %583  ;;  %v2824_v62 = vpop.permute.xlu0 %581 }
  0xf2   : > { %4283 = vst [vmem:[#allocation91_spill] sm:$0xff] %v2822_v3 }
  0xf3   : > { %4284 = vst [vmem:[#allocation92_spill] sm:$0xff] %v2824_v62  ;;  %v2866_v62 = vld [vmem:[%s2146_s19 + $0x180] sm:$0xff] }
  0xf4   : > { %4290 = vst [vmem:[#allocation98_spill] sm:$0xff] %v2866_v62 }
  0xf6   : > { %709 = vrot.lane.b32.xlu2 %v2413_v6, %s2096_s22 }
  0xf7   : > { %707 = vrot.lane.b32.xlu1 %v2370_v54, %s2096_s22  ;;  %705 = vrot.lane.b32.xlu0 %v2376_v56, %s2096_s22 }
  0xf8   : > { %v2832_v2 = vpop.permute.xlu2 %609 }
  0xf9   : > { %v2834_v29 = vpop.permute.xlu1 %589  ;;  %v2836_v33 = vpop.permute.xlu0 %587 }
  0xfa   : > { %4285 = vst [vmem:[#allocation93_spill] sm:$0xff] %v2834_v29 }
  0xfb   : > { %4286 = vst [vmem:[#allocation94_spill] sm:$0xff] %v2836_v33  ;;  %v2863_v33 = vld [vmem:[%s2146_s19 + $0x188] sm:$0xff] }
  0xfe   : > { %715 = vrot.lane.b32.xlu2 %v2404_v43, %s2096_s22 }
  0xff   : > { %713 = vrot.lane.b32.xlu1 %v2401_v42, %s2096_s22  ;;  %711 = vrot.lane.b32.xlu0 %v2407_v11, %s2096_s22 }
 0x100   : > { %v2844_v54 = vpop.permute.xlu2 %615 }
 0x101   : > { %v2846_v56 = vpop.permute.xlu1 %595  ;;  %v2848_v3 = vpop.permute.xlu0 %593 }
 0x106   : > { %721 = vrot.lane.b32.xlu2 %v2473_v34, %s2096_s22 }
 0x107   : > { %719 = vrot.lane.b32.xlu1 %v2436_v41, %s2096_s22  ;;  %717 = vrot.lane.b32.xlu0 %v2442_v17, %s2096_s22 }
 0x108   : > { %v2856_v29 = vpop.permute.xlu2 %621 }
 0x109   : > { %4287 = vst [vmem:[#allocation95_spill] sm:$0xff] %v2856_v29  ;;  %v2858_v42 = vpop.permute.xlu1 %601  ;;  %v2860_v11 = vpop.permute.xlu0 %599 }
 0x10a   : > { %4288 = vst [vmem:[#allocation96_spill] sm:$0xff] %v2858_v42 }
 0x10b   : > { %4289 = vst [vmem:[#allocation97_spill] sm:$0xff] %v2860_v11 }
 0x10e   : > { %727 = vrot.lane.b32.xlu2 %v2863_v33, %s2096_s22 }
 0x10f   : > { %725 = vrot.lane.b32.xlu1 %v2866_v62, %s2096_s22  ;;  %723 = vrot.lane.b32.xlu0 %v2467_v31, %s2096_s22 }
 0x110   : > { %v2874_v34 = vpop.permute.xlu2 %627 }
 0x111   : > { %4291 = vst [vmem:[#allocation99_spill] sm:$0xff] %v2874_v34  ;;  %v2876_v29 = vpop.permute.xlu1 %607  ;;  %v2878_v42 = vpop.permute.xlu0 %605 }
 0x112   : > { %4292 = vst [vmem:[#allocation100_spill] sm:$0xff] %v2876_v29  ;;  %v4323_v29 = vld [vmem:[#allocation19_spill] sm:$0xff] }
 0x113   : > { %4293 = vst [vmem:[#allocation101_spill] sm:$0xff] %v2878_v42 }
 0x116   : > { %771 = vrot.lane.b32.xlu2 %v2176_v13, %s2097_s23 }
 0x117   : > { %769 = vrot.lane.b32.xlu1 %v2200_v22, %s2097_s23  ;;  %767 = vrot.lane.b32.xlu0 %v2187_v16, %s2097_s23 }
 0x118   : > { %v2886_v11 = vpop.permute.xlu2 %667 }
 0x119   : > { %4294 = vst [vmem:[#allocation102_spill] sm:$0xff] %v2886_v11  ;;  %v2888_v43 = vpop.permute.xlu1 %613  ;;  %v2890_v31 = vpop.permute.xlu0 %611 }
 0x11a   : > { %4295 = vst [vmem:[#allocation103_spill] sm:$0xff] %v2888_v43 }
 0x11b   : > { %4296 = vst [vmem:[#allocation104_spill] sm:$0xff] %v2890_v31  ;;  %v4300_v31 = vld [vmem:[#allocation8_spill] sm:$0xff] }
 0x11e   : > { %777 = vrot.lane.b32.xlu2 %v2232_v35, %s2097_s23  ;;  %v4301_v35 = vld [vmem:[#allocation3_spill] sm:$0xff] }
 0x11f   : > { %775 = vrot.lane.b32.xlu1 %v2235_v36, %s2097_s23  ;;  %773 = vrot.lane.b32.xlu0 %v2197_v21, %s2097_s23 }
 0x120   : > { %v2898_v42 = vpop.permute.xlu2 %673 }
 0x121   : > { %4297 = vst [vmem:[#allocation105_spill] sm:$0xff] %v2898_v42  ;;  %v2900_v22 = vpop.permute.xlu1 %619  ;;  %v2902_v16 = vpop.permute.xlu0 %617  ;;  %v4305_v42 = vld [vmem:[#allocation10_spill] sm:$0xff] }
 0x122   : > { %4298 = vst [vmem:[#allocation106_spill] sm:$0xff] %v2900_v22 }
 0x123   : > { %4299 = vst [vmem:[#allocation107_spill] sm:$0xff] %v2902_v16  ;;  %v4306_v16 = vld [vmem:[#allocation11_spill] sm:$0xff] }
 0x126   : > { %783 = vrot.lane.b32.xlu2 %v2263_v46, %s2097_s23  ;;  %v4307_v46 = vld [vmem:[#allocation6_spill] sm:$0xff] }
 0x127   : > { %781 = vrot.lane.b32.xlu1 %v4300_v31, %s2097_s23  ;;  %779 = vrot.lane.b32.xlu0 %v4301_v35, %s2097_s23 }
 0x128   : > { %v2910_v43 = vpop.permute.xlu2 %679 }
 0x129   : > { %4302 = vst [vmem:[#allocation108_spill] sm:$0xff] %v2910_v43  ;;  %v2912_v36 = vpop.permute.xlu1 %625  ;;  %v2914_v21 = vpop.permute.xlu0 %623  ;;  %v4311_v43 = vld [vmem:[#allocation13_spill] sm:$0xff] }
 0x12a   : > { %4303 = vst [vmem:[#allocation109_spill] sm:$0xff] %v2912_v36  ;;  %v4313_v36 = vld [vmem:[#allocation9_spill] sm:$0xff] }
 0x12b   : > { %4304 = vst [vmem:[#allocation110_spill] sm:$0xff] %v2914_v21  ;;  %v4312_v21 = vld [vmem:[#allocation14_spill] sm:$0xff] }
 0x12e   : > { %789 = vrot.lane.b32.xlu2 %v4305_v42, %s2097_s23 }
 0x12f   : > { %787 = vrot.lane.b32.xlu1 %v4306_v16, %s2097_s23  ;;  %785 = vrot.lane.b32.xlu0 %v4307_v46, %s2097_s23 }
 0x130   : > { %v2922_v22 = vpop.permute.xlu2 %685 }
 0x131   : > { %4308 = vst [vmem:[#allocation11_spill] sm:$0xff] %v2922_v22  ;;  %v2924_v31 = vpop.permute.xlu1 %665  ;;  %v2926_v35 = vpop.permute.xlu0 %629  ;;  %v4317_v22 = vld [vmem:[#allocation16_spill] sm:$0xff] }
 0x132   : > { %4309 = vst [vmem:[#allocation111_spill] sm:$0xff] %v2924_v31 }
 0x133   : > { %4310 = vst [vmem:[#allocation112_spill] sm:$0xff] %v2926_v35  ;;  %v4318_v35 = vld [vmem:[#allocation17_spill] sm:$0xff] }
 0x136   : > { %795 = vrot.lane.b32.xlu2 %v4311_v43, %s2097_s23  ;;  %v4319_v43 = vld [vmem:[#allocation12_spill] sm:$0xff] }
 0x137   : > { %793 = vrot.lane.b32.xlu1 %v4312_v21, %s2097_s23  ;;  %791 = vrot.lane.b32.xlu0 %v4313_v36, %s2097_s23 }
 0x138   : > { %v2934_v42 = vpop.permute.xlu2 %691 }
 0x139   : > { %4314 = vst [vmem:[#allocation113_spill] sm:$0xff] %v2934_v42  ;;  %v2936_v11 = vpop.permute.xlu1 %671  ;;  %v2938_v46 = vpop.permute.xlu0 %669 }
 0x13a   : > { %4315 = vst [vmem:[#allocation114_spill] sm:$0xff] %v2936_v11 }
 0x13b   : > { %4316 = vst [vmem:[#allocation115_spill] sm:$0xff] %v2938_v46  ;;  %v4324_v46 = vld [vmem:[#allocation20_spill] sm:$0xff] }
 0x13e   : > { %801 = vrot.lane.b32.xlu2 %v4317_v22, %s2097_s23  ;;  %v4325_v22 = vld [vmem:[#allocation15_spill] sm:$0xff] }
 0x13f   : > { %799 = vrot.lane.b32.xlu1 %v4318_v35, %s2097_s23  ;;  %797 = vrot.lane.b32.xlu0 %v4319_v43, %s2097_s23 }
 0x140   : > { %v2946_v31 = vpop.permute.xlu2 %697 }
 0x141   : > { %4320 = vst [vmem:[#allocation116_spill] sm:$0xff] %v2946_v31  ;;  %v2948_v21 = vpop.permute.xlu1 %677  ;;  %v2950_v36 = vpop.permute.xlu0 %675 }
 0x142   : > { %4321 = vst [vmem:[#allocation117_spill] sm:$0xff] %v2948_v21  ;;  %v4329_v21 = vld [vmem:[#allocation23_spill] sm:$0xff] }
 0x143   : > { %4322 = vst [vmem:[#allocation118_spill] sm:$0xff] %v2950_v36  ;;  %v4330_v36 = vld [vmem:[#allocation24_spill] sm:$0xff] }
 0x146   : > { %807 = vrot.lane.b32.xlu2 %v4323_v29, %s2097_s23  ;;  %v4331_v29 = vld [vmem:[#allocation18_spill] sm:$0xff] }
 0x147   : > { %805 = vrot.lane.b32.xlu1 %v4324_v46, %s2097_s23  ;;  %803 = vrot.lane.b32.xlu0 %v4325_v22, %s2097_s23 }
 0x148   : > { %v2958_v35 = vpop.permute.xlu2 %703 }
 0x149   : > { %4326 = vst [vmem:[#allocation15_spill] sm:$0xff] %v2958_v35  ;;  %v2960_v11 = vpop.permute.xlu1 %683  ;;  %v2962_v43 = vpop.permute.xlu0 %681  ;;  %v4335_v35 = vld [vmem:[#allocation26_spill] sm:$0xff] }
 0x14a   : > { %4327 = vst [vmem:[#allocation119_spill] sm:$0xff] %v2960_v11  ;;  %v4336_v11 = vld [vmem:[#allocation22_spill] sm:$0xff] }
 0x14b   : > { %4328 = vst [vmem:[#allocation120_spill] sm:$0xff] %v2962_v43 }
 0x14e   : > { %813 = vrot.lane.b32.xlu2 %v4329_v21, %s2097_s23 }
 0x14f   : > { %811 = vrot.lane.b32.xlu1 %v4330_v36, %s2097_s23  ;;  %809 = vrot.lane.b32.xlu0 %v4331_v29, %s2097_s23  ;;  %v2989_v29 = vld [vmem:[%s2146_s19 + $0x190] sm:$0x3] }
 0x150   : > { %v2970_v34 = vpop.permute.xlu2 %709 }
 0x151   : > { %4332 = vst [vmem:[#allocation121_spill] sm:$0xff] %v2970_v34  ;;  %v2972_v31 = vpop.permute.xlu1 %689  ;;  %v2974_v46 = vpop.permute.xlu0 %687  ;;  %v762_v34 = vrot.slane %v2866_v62, 1 }
 0x152   : > { %4333 = vst [vmem:[#allocation122_spill] sm:$0xff] %v2972_v31  ;;  %v4340_v31 = vld [vmem:[#allocation25_spill] sm:$0xff] }
 0x153   : > { %4334 = vst [vmem:[#allocation123_spill] sm:$0xff] %v2974_v46  ;;  %v4339_v46 = vld [vmem:[#allocation30_spill] sm:$0xff] }
 0x156   : > { %819 = vrot.lane.b32.xlu2 %v4335_v35, %s2097_s23 }
 0x157   : > { %817 = vrot.lane.b32.xlu1 %v2464_v58, %s2097_s23  ;;  %815 = vrot.lane.b32.xlu0 %v4336_v11, %s2097_s23  ;;  %v763_v11 = vrot.slane %v2863_v33, 1 }
 0x158   : > { %v2982_v21 = vpop.permute.xlu2 %715 }
 0x159   : > { %4337 = vst [vmem:[#allocation26_spill] sm:$0xff] %v2982_v21  ;;  %v2984_v43 = vpop.permute.xlu1 %695  ;;  %v2986_v36 = vpop.permute.xlu0 %693  ;;  %v765_v21 = vrot.slane %v2989_v29, 1 }
 0x15a   : > { %4338 = vst [vmem:[#allocation124_spill] sm:$0xff] %v2986_v36 }
 0x15e   : > { %825 = vrot.lane.b32.xlu2 %v2488_v60, %s2097_s23  ;;  %v3007_v60 = vsel %vm309_vm0, %v763_v11, %v765_v21  ;;  %v4347_v21 = vld [vmem:[#allocation31_spill] sm:$0xff] }
 0x15f   : > { %823 = vrot.lane.b32.xlu1 %v4339_v46, %s2097_s23  ;;  %821 = vrot.lane.b32.xlu0 %v4340_v31, %s2097_s23  ;;  %4343 = vst [vmem:[#allocation127_spill] sm:$0xff] %v3007_v60  ;;  %v3010_v46 = vsel %vm309_vm0, %v762_v34, %v763_v11 }
 0x160   : > { %v2997_v58 = vpop.permute.xlu2 %721  ;;  %4344 = vst [vmem:[#allocation128_spill] sm:$0xff] %v3010_v46 }
 0x161   : > { %4341 = vst [vmem:[#allocation125_spill] sm:$0xff] %v2997_v58  ;;  %v3002_v36 = vpop.permute.xlu1 %701  ;;  %v3004_v42 = vpop.permute.xlu0 %699 }
 0x162   : > { %4342 = vst [vmem:[#allocation126_spill] sm:$0xff] %v3004_v42 }
 0x166   : > { %868 = vrot.lane.b32.xlu2 %v2506_v10, %s2098_s24 }
 0x167   : > { %829 = vrot.lane.b32.xlu1 %v3007_v60, %s2097_s23  ;;  %827 = vrot.lane.b32.xlu0 %v3010_v46, %s2097_s23  ;;  %v4350_v60 = vld [vmem:[#allocation38_spill] sm:$0xff]  ;;  %v4351_v46 = vld [vmem:[#allocation33_spill] sm:$0xff] }
 0x168   : > { %v3018_v58 = vpop.permute.xlu2 %727 }
 0x169   : > { %4345 = vst [vmem:[#allocation129_spill] sm:$0xff] %v3018_v58  ;;  %v3020_v31 = vpop.permute.xlu1 %707  ;;  %v3022_v42 = vpop.permute.xlu0 %705 }
 0x16a   : > { %4346 = vst [vmem:[#allocation130_spill] sm:$0xff] %v3022_v42 }
 0x16e   : > { %874 = vrot.lane.b32.xlu2 %v2525_v9, %s2098_s24 }
 0x16f   : > { %872 = vrot.lane.b32.xlu1 %v2528_v47, %s2098_s24  ;;  %870 = vrot.lane.b32.xlu0 %v4347_v21, %s2098_s24 }
 0x170   : > { %v3030_v34 = vpop.permute.xlu2 %771 }
 0x171   : > { %4348 = vst [vmem:[#allocation31_spill] sm:$0xff] %v3030_v34  ;;  %v3032_v10 = vpop.permute.xlu1 %713  ;;  %v3034_v11 = vpop.permute.xlu0 %711  ;;  %v4354_v34 = vld [vmem:[#allocation41_spill] sm:$0xff] }
 0x172   : > { %4349 = vst [vmem:[#allocation131_spill] sm:$0xff] %v3034_v11  ;;  %v4355_v11 = vld [vmem:[#allocation42_spill] sm:$0xff] }
 0x176   : > { %880 = vrot.lane.b32.xlu2 %v2546_v44, %s2098_s24  ;;  %v4356_v44 = vld [vmem:[#allocation36_spill] sm:$0xff] }
 0x177   : > { %878 = vrot.lane.b32.xlu1 %v4350_v60, %s2098_s24  ;;  %876 = vrot.lane.b32.xlu0 %v4351_v46, %s2098_s24 }
 0x178   : > { %v3042_v58 = vpop.permute.xlu2 %777 }
 0x179   : > { %4352 = vst [vmem:[#allocation132_spill] sm:$0xff] %v3042_v58  ;;  %v3044_v9 = vpop.permute.xlu1 %719  ;;  %v3046_v21 = vpop.permute.xlu0 %717 }
 0x17a   : > { %4353 = vst [vmem:[#allocation133_spill] sm:$0xff] %v3046_v21 }
 0x17e   : > { %886 = vrot.lane.b32.xlu2 %v4354_v34, %s2098_s24  ;;  %v4359_v34 = vld [vmem:[#allocation40_spill] sm:$0xff] }
 0x17f   : > { %884 = vrot.lane.b32.xlu1 %v4355_v11, %s2098_s24  ;;  %882 = vrot.lane.b32.xlu0 %v4356_v44, %s2098_s24 }
 0x180   : > { %v3054_v42 = vpop.permute.xlu2 %783 }
 0x181   : > { %4357 = vst [vmem:[#allocation134_spill] sm:$0xff] %v3054_v42  ;;  %v3056_v60 = vpop.permute.xlu1 %725  ;;  %v3058_v46 = vpop.permute.xlu0 %723  ;;  %v4363_v42 = vld [vmem:[#allocation54_spill] sm:$0xff] }
 0x182   : > { %4358 = vst [vmem:[#allocation135_spill] sm:$0xff] %v3058_v46 }
 0x186   : > { %892 = vrot.lane.b32.xlu2 %v2593_v59, %s2098_s24  ;;  %v4364_v59 = vld [vmem:[#allocation46_spill] sm:$0xff] }
 0x187   : > { %890 = vrot.lane.b32.xlu1 %v2596_v4, %s2098_s24  ;;  %888 = vrot.lane.b32.xlu0 %v4359_v34, %s2098_s24 }
 0x188   : > { %v3066_v58 = vpop.permute.xlu2 %789 }
 0x189   : > { %4360 = vst [vmem:[#allocation40_spill] sm:$0xff] %v3066_v58  ;;  %v3068_v11 = vpop.permute.xlu1 %769  ;;  %v3070_v44 = vpop.permute.xlu0 %767 }
 0x18a   : > { %4361 = vst [vmem:[#allocation136_spill] sm:$0xff] %v3068_v11 }
 0x18b   : > { %4362 = vst [vmem:[#allocation137_spill] sm:$0xff] %v3070_v44  ;;  %v4371_v44 = vld [vmem:[#allocation58_spill] sm:$0xff] }
 0x18e   : > { %898 = vrot.lane.b32.xlu2 %v2619_v32, %s2098_s24  ;;  %v4367_v32 = vld [vmem:[#allocation52_spill] sm:$0xff] }
 0x18f   : > { %896 = vrot.lane.b32.xlu1 %v4363_v42, %s2098_s24  ;;  %894 = vrot.lane.b32.xlu0 %v4364_v59, %s2098_s24 }
 0x190   : > { %v3078_v46 = vpop.permute.xlu2 %795 }
 0x191   : > { %v3080_v21 = vpop.permute.xlu1 %775  ;;  %v3082_v4 = vpop.permute.xlu0 %773 }
 0x192   : > { %4365 = vst [vmem:[#allocation138_spill] sm:$0xff] %v3080_v21 }
 0x193   : > { %4366 = vst [vmem:[#allocation139_spill] sm:$0xff] %v3082_v4  ;;  %v4370_v4 = vld [vmem:[#allocation65_spill] sm:$0xff] }
 0x196   : > { %904 = vrot.lane.b32.xlu2 %v2644_v7, %s2098_s24 }
 0x197   : > { %902 = vrot.lane.b32.xlu1 %v2647_v8, %s2098_s24  ;;  %900 = vrot.lane.b32.xlu0 %v4367_v32, %s2098_s24 }
 0x198   : > { %v3090_v58 = vpop.permute.xlu2 %801 }
 0x199   : > { %v3092_v42 = vpop.permute.xlu1 %781  ;;  %v3094_v59 = vpop.permute.xlu0 %779 }
 0x19a   : > { %4368 = vst [vmem:[#allocation140_spill] sm:$0xff] %v3092_v42 }
 0x19b   : > { %4369 = vst [vmem:[#allocation141_spill] sm:$0xff] %v3094_v59 }
 0x19e   : > { %910 = vrot.lane.b32.xlu2 %v2670_v12, %s2098_s24  ;;  %v4374_v12 = vld [vmem:[#allocation63_spill] sm:$0xff] }
 0x19f   : > { %908 = vrot.lane.b32.xlu1 %v4370_v4, %s2098_s24  ;;  %906 = vrot.lane.b32.xlu0 %v4371_v44, %s2098_s24 }
 0x1a0   : > { %v3102_v21 = vpop.permute.xlu2 %807 }
 0x1a1   : > { %v3104_v8 = vpop.permute.xlu1 %787  ;;  %v3106_v32 = vpop.permute.xlu0 %785 }
 0x1a2   : > { %4372 = vst [vmem:[#allocation58_spill] sm:$0xff] %v3104_v8  ;;  %v864_v8 = vrot.slane %v2863_v33, 2 }
 0x1a3   : > { %4373 = vst [vmem:[#allocation142_spill] sm:$0xff] %v3106_v32  ;;  %v863_v32 = vrot.slane %v2866_v62, 2 }
 0x1a6   : > { %916 = vrot.lane.b32.xlu2 %v2695_v15, %s2098_s24  ;;  %v4377_v15 = vld [vmem:[#allocation69_spill] sm:$0xff] }
 0x1a7   : > { %914 = vrot.lane.b32.xlu1 %v2698_v27, %s2098_s24  ;;  %912 = vrot.lane.b32.xlu0 %v4374_v12, %s2098_s24 }
 0x1a8   : > { %v3114_v59 = vpop.permute.xlu2 %813 }
 0x1a9   : > { %4375 = vst [vmem:[#allocation143_spill] sm:$0xff] %v3114_v59  ;;  %v3116_v42 = vpop.permute.xlu1 %793  ;;  %v3118_v4 = vpop.permute.xlu0 %791 }
 0x1aa   : > { %4376 = vst [vmem:[#allocation144_spill] sm:$0xff] %v3118_v4  ;;  %v3133_v4 = vsel %vm486_vm1, %v863_v32, %v864_v8 }
 0x1ab   : > { %4379 = vst [vmem:[#allocation146_spill] sm:$0xff] %v3133_v4 }
 0x1ae   : > { %922 = vrot.lane.b32.xlu2 %v2721_v40, %s2098_s24 }
 0x1af   : > { %920 = vrot.lane.b32.xlu1 %v2724_v51, %s2098_s24  ;;  %918 = vrot.lane.b32.xlu0 %v4377_v15, %s2098_s24  ;;  %v866_v15 = vrot.slane %v2989_v29, 2 }
 0x1b0   : > { %v3128_v27 = vpop.permute.xlu2 %819 }
 0x1b1   : > { %4378 = vst [vmem:[#allocation145_spill] sm:$0xff] %v3128_v27  ;;  %v3130_v12 = vpop.permute.xlu1 %799  ;;  %v798_v59 = vpop.permute.xlu0 %797  ;;  %v3147_v11 = vsel %vm486_vm1, %v864_v8, %v866_v15  ;;  %v1281_v15 = vsel %vm1265_vm2, %v2272_v49, %v2715_v38 }
 0x1b6   : > { %928 = vrot.lane.b32.xlu2 %v3133_v4, %s2098_s24 }
 0x1b7   : > { %926 = vrot.lane.b32.xlu1 %v2740_v55, %s2098_s24  ;;  %924 = vrot.lane.b32.xlu0 %v2718_v14, %s2098_s24 }
 0x1b8   : > { %v3141_v33 = vpop.permute.xlu2 %825 }
 0x1b9   : > { %v3144_v62 = vpop.permute.xlu1 %805  ;;  %v804_v27 = vpop.permute.xlu0 %803 }
 0x1be   : > { %968 = vrot.lane.b32.xlu2 %v2152_v1, %s2099_s25 }
 0x1bf   : > { %966 = vrot.lane.b32.xlu1 %v2149_v0, %s2099_s25  ;;  %930 = vrot.lane.b32.xlu0 %v3147_v11, %s2098_s24 }
 0x1c0   : > { %v3155_v32 = vpop.permute.xlu2 %868 }
 0x1c1   : > { %v3157_v4 = vpop.permute.xlu1 %811  ;;  %v810_v29 = vpop.permute.xlu0 %809 }
 0x1c6   : > { %974 = vrot.lane.b32.xlu2 %v2204_v24, %s2099_s25 }
 0x1c7   : > { %972 = vrot.lane.b32.xlu1 %v2210_v26, %s2099_s25  ;;  %970 = vrot.lane.b32.xlu0 %v2216_v28, %s2099_s25 }
 0x1c8   : > { %v3165_v1 = vpop.permute.xlu2 %874 }
 0x1c9   : > { %v3167_v0 = vpop.permute.xlu1 %817  ;;  %v3169_v8 = vpop.permute.xlu0 %815 }
 0x1ce   : > { %980 = vrot.lane.b32.xlu2 %v2238_v37, %s2099_s25 }
 0x1cf   : > { %978 = vrot.lane.b32.xlu1 %v2244_v39, %s2099_s25  ;;  %976 = vrot.lane.b32.xlu0 %v2207_v25, %s2099_s25 }
 0x1d0   : > { %v3177_v24 = vpop.permute.xlu2 %880 }
 0x1d1   : > { %v3179_v26 = vpop.permute.xlu1 %823  ;;  %v3181_v28 = vpop.permute.xlu0 %821 }
 0x1d6   : > { %986 = vrot.lane.b32.xlu2 %v2269_v48, %s2099_s25 }
 0x1d7   : > { %984 = vrot.lane.b32.xlu1 %v2275_v50, %s2099_s25  ;;  %982 = vrot.lane.b32.xlu0 %v2281_v52, %s2099_s25 }
 0x1d8   : > { %v3189_v37 = vpop.permute.xlu2 %886 }
 0x1d9   : > { %4380 = vst [vmem:[#allocation147_spill] sm:$0xff] %v3189_v37  ;;  %v3191_v39 = vpop.permute.xlu1 %829  ;;  %v3193_v25 = vpop.permute.xlu0 %827 }
 0x1de   : > { %992 = vrot.lane.b32.xlu2 %v2304_v61, %s2099_s25  ;;  %v1314_v61 = vsel %vm1298_vm3, %v1281_v15, %v2808_v5 }
 0x1df   : > { %990 = vrot.lane.b32.xlu1 %v2310_v63, %s2099_s25  ;;  %988 = vrot.lane.b32.xlu0 %v2272_v49, %s2099_s25  ;;  %v1347_v63 = vsel %vm1331_vm4, %v1314_v61, %v2984_v43  ;;  %v1284_v43 = vsel %vm1265_vm2, %v2347_v30, %v2737_v57 }
 0x1e0   : > { %v3201_v48 = vpop.permute.xlu2 %892  ;;  %v1380_v49 = vsel %vm1364_vm5, %v1347_v63, %v798_v59 }
 0x1e1   : > { %v3203_v50 = vpop.permute.xlu1 %872  ;;  %v3205_v52 = vpop.permute.xlu0 %870 }
 0x1e6   : > { %998 = vrot.lane.b32.xlu2 %v2335_v19, %s2099_s25 }
 0x1e7   : > { %996 = vrot.lane.b32.xlu1 %v2341_v23, %s2099_s25  ;;  %994 = vrot.lane.b32.xlu0 %v2347_v30, %s2099_s25  ;;  %v1317_v23 = vsel %vm1298_vm3, %v1284_v43, %v2820_v45 }
 0x1e8   : > { %v899_v38 = vpop.permute.xlu2 %898  ;;  %v1350_v59 = vsel %vm1331_vm4, %v1317_v23, %v3002_v36  ;;  %v1287_v36 = vsel %vm1265_vm2, %v2338_v20, %v2752_v18 }
 0x1e9   : > { %v3221_v37 = vpop.permute.xlu1 %878  ;;  %v3224_v5 = vsel %vm1397_vm6, %v1380_v49, %v899_v38  ;;  %v3226_v19 = vpop.permute.xlu0 %876  ;;  %v1383_v15 = vsel %vm1364_vm5, %v1350_v59, %v804_v27  ;;  %v4381_v49 = vld [vmem:[#allocation49_spill] sm:$0xff]  ;;  %v4384_v59 = vld [vmem:[#allocation124_spill] sm:$0xff] }
 0x1ea   : > { %v2041_v38 = vld [vmem:[%s2146_s19 + $0x98] sm:$0xff] }
 0x1ee   : > { %1100 = vrot.lane.b32.xlu2 %v4325_v22, %s2100_s26 }
 0x1ef   : > { %1014 = vrot.lane.b32.xlu1 %v2442_v17, %s2099_s25  ;;  %1000 = vrot.lane.b32.xlu0 %v2338_v20, %s2099_s25  ;;  %v1320_v17 = vsel %vm1298_vm3, %v1287_v36, %v2832_v2 }
 0x1f0   : > { %v905_v61 = vpop.permute.xlu2 %904  ;;  %v1353_v27 = vsel %vm1331_vm4, %v1320_v17, %v3020_v31  ;;  %v2040_v31 = vld [vmem:[%s2146_s19 + $0xa8] sm:$0xff] }
 0x1f1   : > { %v3242_v30 = vpop.permute.xlu1 %884  ;;  %v3245_v57 = vsel %vm1397_vm6, %v1383_v15, %v905_v61  ;;  %v3247_v45 = vpop.permute.xlu0 %882  ;;  %v1386_v22 = vsel %vm1364_vm5, %v1353_v27, %v810_v29 }
 0x1f6   : > { %1217 = vrot.lane.b32.xlu2 %v2724_v51, %s2101_s27  ;;  %v1290_v51 = vsel %vm1265_vm2, %v2413_v6, %v2764_v53 }
 0x1f7   : > { %1201 = vrot.lane.b32.xlu1 %v2644_v7, %s2101_s27  ;;  %1116 = vrot.lane.b32.xlu0 %v4335_v35, %s2100_s26  ;;  %v1280_v7 = vsel %vm1265_vm2, %v2040_v31, %v4381_v49  ;;  %v4382_v35 = vld [vmem:[#allocation67_spill] sm:$0xff]  ;;  %v1323_v43 = vsel %vm1298_vm3, %v1290_v51, %v2844_v54  ;;  %v4383_v54 = vld [vmem:[#allocation113_spill] sm:$0xff] }
 0x1f8   : > { %v911_v63 = vpop.permute.xlu2 %910  ;;  %v1279_v29 = vsel %vm1265_vm2, %v2041_v38, %v4382_v35  ;;  %v1313_v23 = vsel %vm1298_vm3, %v1280_v7, %v2846_v56  ;;  %v1356_v53 = vsel %vm1331_vm4, %v1323_v43, %v3032_v10  ;;  %v2042_v51 = vld [vmem:[%s2146_s19 + $0xc8] sm:$0xff]  ;;  %v4388_v49 = vld [vmem:[#allocation73_spill] sm:$0xff]  ;;  %v4391_v43 = vld [vmem:[#allocation96_spill] sm:$0xff] }
 0x1f9   : > { %v3263_v20 = vpop.permute.xlu1 %890  ;;  %v3266_v18 = vsel %vm1397_vm6, %v1386_v22, %v911_v63  ;;  %v3268_v2 = vpop.permute.xlu0 %888  ;;  %v1312_v6 = vsel %vm1298_vm3, %v1279_v29, %v2848_v3  ;;  %v1346_v56 = vsel %vm1331_vm4, %v1313_v23, %v4384_v59  ;;  %v1389_v3 = vsel %vm1364_vm5, %v1356_v53, %v3169_v8  ;;  %v4385_v22 = vld [vmem:[#allocation82_spill] sm:$0xff]  ;;  %v4386_v8 = vld [vmem:[#allocation21_spill] sm:$0xff]  ;;  %v4389_v38 = vld [vmem:[#allocation95_spill] sm:$0xff] }
 0x1fa   : > { %v1379_v10 = vsel %vm1364_vm5, %v1346_v56, %v3078_v46  ;;  %v1293_v63 = vsel %vm1265_vm2, %v4386_v8, %v4385_v22  ;;  %v4387_v46 = vld [vmem:[#allocation55_spill] sm:$0xff]  ;;  %v4390_v29 = vld [vmem:[#allocation20_spill] sm:$0xff]  ;;  %v4394_v56 = vld [vmem:[#allocation126_spill] sm:$0xff] }
 0x1fb   : > { %v1283_v31 = vsel %vm1265_vm2, %v2042_v51, %v4387_v46  ;;  %v1326_v35 = vsel %vm1298_vm3, %v1293_v63, %v4389_v38  ;;  %v4395_v8 = vld [vmem:[#allocation85_spill] sm:$0xff]  ;;  %v2044_v51 = vld [vmem:[%s2146_s19 + $0xf0] sm:$0xff] }
 0x1fc   : > { %v1316_v23 = vsel %vm1298_vm3, %v1283_v31, %v4391_v43  ;;  %v4398_v31 = vld [vmem:[#allocation75_spill] sm:$0xff]  ;;  %v4400_v38 = vld [vmem:[#allocation100_spill] sm:$0xff] }
 0x1fe   : > { %1016 = vrot.lane.b32.xlu2 %v2436_v41, %s2099_s25  ;;  %v1345_v41 = vsel %vm1331_vm4, %v1312_v6, %v4383_v54  ;;  %v4392_v6 = vld [vmem:[#allocation97_spill] sm:$0xff]  ;;  %v1359_v54 = vsel %vm1331_vm4, %v1326_v35, %v3044_v9 }
 0x1ff   : > { %1084 = vrot.lane.b32.xlu1 %v4306_v16, %s2100_s26  ;;  %1068 = vrot.lane.b32.xlu0 %v2176_v13, %s2100_s26  ;;  %v1378_v16 = vsel %vm1364_vm5, %v1345_v41, %v3116_v42  ;;  %v2043_v42 = vld [vmem:[%s2146_s19 + $0xc0] sm:$0xff]  ;;  %v4393_v41 = vld [vmem:[#allocation116_spill] sm:$0xff] }
 0x200   : > { %v917_v15 = vpop.permute.xlu2 %916  ;;  %v1282_v7 = vsel %vm1265_vm2, %v2043_v42, %v4388_v49  ;;  %v4399_v49 = vld [vmem:[#allocation99_spill] sm:$0xff] }
 0x201   : > { %v897_v61 = vpop.permute.xlu1 %896  ;;  %v3304_v36 = vsel %vm1397_vm6, %v1389_v3, %v917_v15  ;;  %v895_v13 = vpop.permute.xlu0 %894  ;;  %v1315_v53 = vsel %vm1298_vm3, %v1282_v7, %v4392_v6  ;;  %v1349_v3 = vsel %vm1331_vm4, %v1316_v23, %v4394_v56  ;;  %v1392_v15 = vsel %vm1364_vm5, %v1359_v54, %v3181_v28  ;;  %v4396_v28 = vld [vmem:[#allocation28_spill] sm:$0xff]  ;;  %v4402_v6 = vld [vmem:[#allocation25_spill] sm:$0xff]  ;;  %v4404_v54 = vld [vmem:[#allocation130_spill] sm:$0xff] }
 0x202   : > { %v3307_v17 = vsel %vm1397_vm6, %v1379_v10, %v897_v61  ;;  %v3310_v27 = vsel %vm1397_vm6, %v1378_v16, %v895_v13  ;;  %v1348_v59 = vsel %vm1331_vm4, %v1315_v53, %v4393_v41  ;;  %v1382_v9 = vsel %vm1364_vm5, %v1349_v3, %v3090_v58  ;;  %v4397_v58 = vld [vmem:[#allocation60_spill] sm:$0xff]  ;;  %v4403_v53 = vld [vmem:[#allocation15_spill] sm:$0xff] }
 0x203   : > { %v1296_v63 = vsel %vm1265_vm2, %v4396_v28, %v4395_v8  ;;  %v1286_v46 = vsel %vm1265_vm2, %v2044_v51, %v4397_v58  ;;  %v4406_v8 = vld [vmem:[#allocation88_spill] sm:$0xff]  ;;  %v2048_v51 = vld [vmem:[%s2146_s19 + $0x108] sm:$0xff]  ;;  %v4408_v58 = vld [vmem:[#allocation77_spill] sm:$0xff] }
 0x204   : > { %v1329_v7 = vsel %vm1298_vm3, %v1296_v63, %v4399_v49  ;;  %v1319_v35 = vsel %vm1298_vm3, %v1286_v46, %v4400_v38  ;;  %v3402_v28 = vld [vmem:[%s2146_s19 + $0x110] sm:$0xff]  ;;  %v1288_v46 = vsel %vm1265_vm2, %v2048_v51, %v4408_v58 }
 0x205   : > { %v1362_v23 = vsel %vm1331_vm4, %v1329_v7, %v3056_v60  ;;  %v1352_v41 = vsel %vm1331_vm4, %v1319_v35, %v4404_v54  ;;  %v4411_v7 = vld [vmem:[#allocation104_spill] sm:$0xff] }
 0x206   : > { %1102 = vrot.lane.b32.xlu2 %v4390_v29, %s2100_s26  ;;  %v4401_v29 = vld [vmem:[#allocation101_spill] sm:$0xff]  ;;  %v1385_v60 = vsel %vm1364_vm5, %v1352_v41, %v3102_v21  ;;  %v1321_v38 = vsel %vm1298_vm3, %v1288_v46, %v4411_v7  ;;  %v4412_v35 = vld [vmem:[#allocation136_spill] sm:$0xff]  ;;  %v3454_v46 = vld [vmem:[%s2146_s19 + $0x128] sm:$0xff] }
 0x207   : > { %1185 = vrot.lane.b32.xlu1 %v4359_v34, %s2101_s27  ;;  %1169 = vrot.lane.b32.xlu0 %v2528_v47, %s2101_s27  ;;  %v1381_v34 = vsel %vm1364_vm5, %v1348_v59, %v3130_v12  ;;  %v2045_v12 = vld [vmem:[%s2146_s19 + $0xe0] sm:$0xff]  ;;  %v1395_v59 = vsel %vm1364_vm5, %v1362_v23, %v3193_v25  ;;  %v4405_v25 = vld [vmem:[#allocation51_spill] sm:$0xff]  ;;  %v4423_v7 = vld [vmem:[#allocation48_spill] sm:$0xff] }
 0x208   : > { %v923_v10 = vpop.permute.xlu2 %922  ;;  %v1285_v42 = vsel %vm1265_vm2, %v2045_v12, %v4398_v31  ;;  %v4409_v12 = vld [vmem:[#allocation102_spill] sm:$0xff] }
 0x209   : > { %v903_v16 = vpop.permute.xlu1 %902  ;;  %v3346_v61 = vsel %vm1397_vm6, %v1392_v15, %v923_v10  ;;  %v901_v47 = vpop.permute.xlu0 %900  ;;  %v1318_v43 = vsel %vm1298_vm3, %v1285_v42, %v4401_v29  ;;  %v4410_v42 = vld [vmem:[#allocation103_spill] sm:$0xff]  ;;  %v4414_v23 = vld [vmem:[#allocation2_spill] sm:$0xff] }
 0x20a   : > { %v3349_v13 = vsel %vm1397_vm6, %v1382_v9, %v903_v16  ;;  %v3352_v22 = vsel %vm1397_vm6, %v1381_v34, %v901_v47  ;;  %v2046_v16 = vld [vmem:[%s2146_s19 + $0x8] sm:$0xff] }
 0x20b   : > { %v1267_v47 = vsel %vm1265_vm2, %v2046_v16, %v4405_v25 }
 0x20c   : > { %v1300_v21 = vsel %vm1298_vm3, %v1267_v47, %v4406_v8  ;;  %v4418_v8 = vld [vmem:[#allocation32_spill] sm:$0xff] }
 0x20d   : > { %v1333_v31 = vsel %vm1331_vm4, %v1300_v21, %v4409_v12  ;;  %v4421_v12 = vld [vmem:[#allocation79_spill] sm:$0xff] }
 0x20e   : > { %1219 = vrot.lane.b32.xlu2 %v2721_v40, %s2101_s27  ;;  %v1351_v40 = vsel %vm1331_vm4, %v1318_v43, %v4403_v53  ;;  %v1366_v29 = vsel %vm1364_vm5, %v1333_v31, %v4412_v35  ;;  %v4413_v43 = vld [vmem:[#allocation10_spill] sm:$0xff]  ;;  %v1291_v31 = vsel %vm1265_vm2, %v3454_v46, %v4421_v12 }
 0x20f   : > { %1203 = vrot.lane.b32.xlu1 %v4371_v44, %s2101_s27  ;;  %1118 = vrot.lane.b32.xlu0 %v4402_v6, %s2100_s26  ;;  %v1384_v44 = vsel %vm1364_vm5, %v1351_v40, %v3144_v62  ;;  %v4407_v62 = vld [vmem:[#allocation66_spill] sm:$0xff]  ;;  %v4415_v6 = vld [vmem:[#allocation121_spill] sm:$0xff]  ;;  %v4416_v40 = vld [vmem:[#allocation131_spill] sm:$0xff]  ;;  %v1399_v41 = vsel %vm1397_vm6, %v1366_v29, %v3205_v52 }
 0x210   : > { %v929_v56 = vpop.permute.xlu2 %928  ;;  %v1289_v63 = vsel %vm1265_vm2, %v3402_v28, %v4407_v62  ;;  %v1354_v53 = vsel %vm1331_vm4, %v1321_v38, %v4415_v6  ;;  %v2049_v52 = vld [vmem:[%s2146_s19 + $0x30] sm:$0xff]  ;;  %v4419_v62 = vld [vmem:[#allocation90_spill] sm:$0xff]  ;;  %v4425_v29 = vld [vmem:[#allocation107_spill] sm:$0xff] }
 0x211   : > { %v909_v3 = vpop.permute.xlu1 %908  ;;  %v3388_v15 = vsel %vm1397_vm6, %v1395_v59, %v929_v56  ;;  %v907_v10 = vpop.permute.xlu0 %906  ;;  %v1322_v49 = vsel %vm1298_vm3, %v1289_v63, %v4410_v42  ;;  %v4417_v56 = vld [vmem:[#allocation143_spill] sm:$0xff]  ;;  %v1270_v21 = vsel %vm1265_vm2, %v2049_v52, %v4418_v8  ;;  %v4422_v42 = vld [vmem:[#allocation105_spill] sm:$0xff]  ;;  %v4424_v38 = vld [vmem:[#allocation106_spill] sm:$0xff] }
 0x212   : > { %v3391_v9 = vsel %vm1397_vm6, %v1385_v60, %v909_v3  ;;  %v3394_v34 = vsel %vm1397_vm6, %v1384_v44, %v907_v10  ;;  %v1355_v54 = vsel %vm1331_vm4, %v1322_v49, %v4416_v40  ;;  %v1387_v44 = vsel %vm1364_vm5, %v1354_v53, %v3157_v4  ;;  %v3448_v4 = vld [vmem:[%s2146_s19 + $0x138] sm:$0xff]  ;;  %v4427_v53 = vld [vmem:[#allocation34_spill] sm:$0xff]  ;;  %v2052_v40 = vld [vmem:[%s2146_s19 + $0x168] sm:$0xff] }
 0x213   : > { %v1388_v60 = vsel %vm1364_vm5, %v1355_v54, %v4417_v56  ;;  %v1303_v63 = vsel %vm1298_vm3, %v1270_v21, %v4419_v62  ;;  %v4428_v54 = vld [vmem:[#allocation26_spill] sm:$0xff] }
 0x214   : > { %v1336_v49 = vsel %vm1331_vm4, %v1303_v63, %v4422_v42 }
 0x216   : > { %1002 = vrot.lane.b32.xlu2 %v2048_v51, %s2099_s25  ;;  %v4420_v51 = vld [vmem:[#allocation72_spill] sm:$0xff] }
 0x217   : > { %1086 = vrot.lane.b32.xlu1 %v4413_v43, %s2100_s26  ;;  %1070 = vrot.lane.b32.xlu0 %v4414_v23, %s2100_s26  ;;  %v1292_v58 = vsel %vm1265_vm2, %v3448_v4, %v4420_v51  ;;  %v1324_v43 = vsel %vm1298_vm3, %v1291_v31, %v4425_v29  ;;  %v4426_v23 = vld [vmem:[#allocation138_spill] sm:$0xff]  ;;  %v4432_v31 = vld [vmem:[#allocation92_spill] sm:$0xff] }
 0x218   : > { %v969_v59 = vpop.permute.xlu2 %968  ;;  %v1325_v35 = vsel %vm1298_vm3, %v1292_v58, %v4424_v38  ;;  %v1369_v6 = vsel %vm1364_vm5, %v1336_v49, %v4426_v23  ;;  %v2053_v58 = vld [vmem:[%s2146_s19 + $0x50] sm:$0xff]  ;;  %v2054_v49 = vld [vmem:[%s2146_s19 + $0x158] sm:$0xff] }
 0x219   : > { %v915_v3 = vpop.permute.xlu1 %914  ;;  %v3434_v10 = vsel %vm1430_vm7, %v1399_v41, %v969_v59  ;;  %v913_v16 = vpop.permute.xlu0 %912  ;;  %v1357_v41 = vsel %vm1331_vm4, %v1324_v43, %v4428_v54  ;;  %v4429_v59 = vld [vmem:[#allocation133_spill] sm:$0xff]  ;;  %v2055_v38 = vld [vmem:[%s2146_s19 + $0x150] sm:$0xff]  ;;  %v4438_v54 = vld [vmem:[#allocation110_spill] sm:$0xff] }
 0x21a   : > { %v3437_v25 = vsel %vm1397_vm6, %v1388_v60, %v915_v3  ;;  %v3440_v47 = vsel %vm1397_vm6, %v1387_v44, %v913_v16  ;;  %v1358_v56 = vsel %vm1331_vm4, %v1325_v35, %v4429_v59  ;;  %v1402_v60 = vsel %vm1397_vm6, %v1369_v6, %v3226_v19  ;;  %v4430_v3 = vld [vmem:[#allocation145_spill] sm:$0xff]  ;;  %v4431_v19 = vld [vmem:[#allocation56_spill] sm:$0xff] }
 0x21b   : > { %v1391_v16 = vsel %vm1364_vm5, %v1358_v56, %v4430_v3  ;;  %v1390_v52 = vsel %vm1364_vm5, %v1357_v41, %v3167_v0  ;;  %v1273_v12 = vsel %vm1265_vm2, %v2053_v58, %v4431_v19  ;;  %v4433_v0 = vld [vmem:[#allocation74_spill] sm:$0xff]  ;;  %v4434_v35 = vld [vmem:[#allocation81_spill] sm:$0xff]  ;;  %v4435_v43 = vld [vmem:[#allocation108_spill] sm:$0xff] }
 0x21c   : > { %v1306_v42 = vsel %vm1298_vm3, %v1273_v12, %v4432_v31  ;;  %v1294_v29 = vsel %vm1265_vm2, %v2055_v38, %v4434_v35  ;;  %v4436_v6 = vld [vmem:[#allocation65_spill] sm:$0xff]  ;;  %v4439_v59 = vld [vmem:[#allocation140_spill] sm:$0xff] }
 0x21d   : > { %v1339_v23 = vsel %vm1331_vm4, %v1306_v42, %v4435_v43  ;;  %v1327_v41 = vsel %vm1298_vm3, %v1294_v29, %v4438_v54  ;;  %v4442_v3 = vld [vmem:[#allocation125_spill] sm:$0xff]  ;;  %v2057_v29 = vld [vmem:[%s2146_s19] sm:$0xff] }
 0x21e   : > { %1187 = vrot.lane.b32.xlu2 %v4423_v7, %s2101_s27  ;;  %v1295_v7 = vsel %vm1265_vm2, %v2054_v49, %v4433_v0  ;;  %v1372_v56 = vsel %vm1364_vm5, %v1339_v23, %v4439_v59  ;;  %v4444_v38 = vld [vmem:[#allocation61_spill] sm:$0xff]  ;;  %v4448_v59 = vld [vmem:[#allocation84_spill] sm:$0xff] }
 0x21f   : > { %1171 = vrot.lane.b32.xlu1 %v4427_v53, %s2101_s27  ;;  %1018 = vrot.lane.b32.xlu0 %v2052_v40, %s2099_s25  ;;  %v4437_v53 = vld [vmem:[#allocation109_spill] sm:$0xff] }
 0x220   : > { %v975_v44 = vpop.permute.xlu2 %974  ;;  %v1328_v40 = vsel %vm1298_vm3, %v1295_v7, %v4437_v53  ;;  %v4445_v43 = vld [vmem:[#allocation45_spill] sm:$0xff] }
 0x221   : > { %v921_v8 = vpop.permute.xlu1 %920  ;;  %v3484_v21 = vsel %vm1430_vm7, %v1402_v60, %v975_v44  ;;  %v919_v62 = vpop.permute.xlu0 %918  ;;  %v4440_v60 = vld [vmem:[#allocation30_spill] sm:$0xff]  ;;  %v4441_v44 = vld [vmem:[#allocation19_spill] sm:$0xff]  ;;  %v1266_v23 = vsel %vm1265_vm2, %v2057_v29, %v4445_v43 }
 0x222   : > { %v3487_v63 = vsel %vm1397_vm6, %v1391_v16, %v921_v8  ;;  %v3490_v51 = vsel %vm1397_vm6, %v1390_v52, %v919_v62  ;;  %v1360_v16 = vsel %vm1331_vm4, %v1327_v41, %v4442_v3  ;;  %v4443_v52 = vld [vmem:[#allocation135_spill] sm:$0xff]  ;;  %v1405_v62 = vsel %vm1397_vm6, %v1372_v56, %v3247_v45  ;;  %v1577_v45 = vld [vmem:[%s4101_s1 + $0x78] sm:$0xff]  ;;  %v2058_v41 = vld [vmem:[%s2146_s19 + $0x170] sm:$0xff] }
 0x223   : > { %v1361_v8 = vsel %vm1331_vm4, %v1328_v40, %v4443_v52  ;;  %v1393_v12 = vsel %vm1364_vm5, %v1360_v16, %v3179_v26  ;;  %1959 = vmatpush.msra.mxu2 %v1577_v45  ;;  %1960 = vmatpush.msra.mxu3 %v1577_v45  ;;  %v2056_v26 = vld [vmem:[%s2146_s19 + $0x78] sm:$0xff]  ;;  %v4447_v40 = vld [vmem:[#allocation76_spill] sm:$0xff]  ;;  %v1297_v56 = vsel %vm1265_vm2, %v2058_v41, %v4448_v59  ;;  %v4451_v16 = vld [vmem:[#allocation111_spill] sm:$0xff] }
 0x224   : > { %v1394_v19 = vsel %vm1364_vm5, %v1361_v8, %v3141_v33  ;;  %v1576_v33 = vld [vmem:[%s4101_s1 + $0x70] sm:$0xff]  ;;  %v1276_v35 = vsel %vm1265_vm2, %v2056_v26, %v4444_v38  ;;  %1582 = vmatpush.msra.mxu0 %v1577_v45  ;;  %1958 = vmatpush.msra.mxu1 %v1577_v45  ;;  %v1299_v54 = vsel %vm1298_vm3, %v1266_v23, %v4447_v40  ;;  %v4450_v3 = vld [vmem:[#allocation9_spill] sm:$0xff] }
 0x225   : > { %1962 = vmatpush.msra.mxu2 %v1576_v33  ;;  %1963 = vmatpush.msra.mxu3 %v1576_v33  ;;  %v1332_v52 = vsel %vm1331_vm4, %v1299_v54, %v4451_v16  ;;  %v4452_v8 = vld [vmem:[#allocation112_spill] sm:$0xff]  ;;  %v4456_v26 = vld [vmem:[#allocation137_spill] sm:$0xff]  ;;  %v4459_v16 = vld [vmem:[#allocation78_spill] sm:$0xff] }
 0x226   : > { %1205 = vrot.lane.b32.xlu2 %v4436_v6, %s2101_s27  ;;  %v4446_v6 = vld [vmem:[#allocation94_spill] sm:$0xff]  ;;  %1583 = vmatpush.msra.mxu0 %v1576_v33  ;;  %v1365_v38 = vsel %vm1364_vm5, %v1332_v52, %v4456_v26  ;;  %v1572_v54 = vld [vmem:[%s4101_s1 + $0x50] sm:$0xff]  ;;  %v4464_v26 = vld [vmem:[#allocation31_spill] sm:$0xff] }
 0x227   : > { %1120 = vrot.lane.b32.xlu1 %v4440_v60, %s2100_s26  ;;  %1104 = vrot.lane.b32.xlu0 %v4441_v44, %s2100_s26  ;;  %v1309_v53 = vsel %vm1298_vm3, %v1276_v35, %v4446_v6  ;;  %v4449_v60 = vld [vmem:[#allocation11_spill] sm:$0xff]  ;;  %v1398_v43 = vsel %vm1397_vm6, %v1365_v38, %v3155_v32  ;;  %v4457_v59 = vld [vmem:[#allocation44_spill] sm:$0xff] }
 0x228   : > { %v981_v58 = vpop.permute.xlu2 %980  ;;  %v1342_v44 = vsel %vm1331_vm4, %v1309_v53, %v4449_v60  ;;  %1961 = vmatpush.msra.mxu1 %v1576_v33  ;;  %v2059_v33 = vld [vmem:[%s2146_s19 + $0x18] sm:$0xff]  ;;  %v2060_v60 = vld [vmem:[%s2146_s19 + $0x20] sm:$0xff] }
 0x229   : > { %v927_v31 = vpop.permute.xlu1 %926  ;;  %v3528_v42 = vsel %vm1430_vm7, %v1405_v62, %v981_v58  ;;  %v925_v49 = vpop.permute.xlu0 %924  ;;  %v1330_v62 = vsel %vm1298_vm3, %v1297_v56, %v4452_v8  ;;  %v4453_v58 = vld [vmem:[#allocation58_spill] sm:$0xff]  ;;  %v1268_v56 = vsel %vm1265_vm2, %v2059_v33, %v4457_v59  ;;  %v4460_v8 = vld [vmem:[#allocation87_spill] sm:$0xff] }
 0x22a   : > { %v3531_v0 = vsel %vm1397_vm6, %v1394_v19, %v927_v31  ;;  %v3534_v7 = vsel %vm1397_vm6, %v1393_v12, %v925_v49  ;;  %v1375_v19 = vsel %vm1364_vm5, %v1342_v44, %v4453_v58  ;;  %v4454_v12 = vld [vmem:[#allocation5_spill] sm:$0xff]  ;;  %v1575_v31 = vld [vmem:[%s4101_s1 + $0x68] sm:$0xff]  ;;  %v4458_v44 = vld [vmem:[#allocation50_spill] sm:$0xff] }
 0x22b   : > { %v4455_v49 = vld [vmem:[#allocation129_spill] sm:$0xff]  ;;  %v1408_v35 = vsel %vm1397_vm6, %v1375_v19, %v3268_v2  ;;  %1965 = vmatpush.msra.mxu2 %v1575_v31  ;;  %1966 = vmatpush.msra.mxu3 %v1575_v31  ;;  %v1574_v2 = vld [vmem:[%s4101_s1 + $0x60] sm:$0xff]  ;;  %v4466_v59 = vld [vmem:[#allocation35_spill] sm:$0xff] }
 0x22c   : > { %v1363_v45 = vsel %vm1331_vm4, %v1330_v62, %v4455_v49  ;;  %1584 = vmatpush.msra.mxu0 %v1575_v31  ;;  %1964 = vmatpush.msra.mxu1 %v1575_v31  ;;  %v1301_v62 = vsel %vm1298_vm3, %v1268_v56, %v4460_v8  ;;  %v4461_v58 = vld [vmem:[#allocation33_spill] sm:$0xff]  ;;  %v4462_v19 = vld [vmem:[#allocation114_spill] sm:$0xff]  ;;  %v4463_v31 = vld [vmem:[#allocation115_spill] sm:$0xff] }
 0x22d   : > { %1968 = vmatpush.msra.mxu2 %v1574_v2  ;;  %1969 = vmatpush.msra.mxu3 %v1574_v2  ;;  %v1334_v49 = vsel %vm1331_vm4, %v1301_v62, %v4463_v31  ;;  %v2062_v56 = vld [vmem:[%s2146_s19 + $0x48] sm:$0xff]  ;;  %v4470_v62 = vld [vmem:[#allocation29_spill] sm:$0xff] }
 0x22e   : > { %1088 = vrot.lane.b32.xlu2 %v4450_v3, %s2100_s26  ;;  %1585 = vmatpush.msra.mxu0 %v1574_v2  ;;  %v1269_v3 = vsel %vm1265_vm2, %v2060_v60, %v4458_v44  ;;  %v1367_v38 = vsel %vm1364_vm5, %v1334_v49, %v4464_v26  ;;  %v4467_v60 = vld [vmem:[#allocation57_spill] sm:$0xff]  ;;  %v4473_v49 = vld [vmem:[#allocation18_spill] sm:$0xff]  ;;  %v1567_v26 = vld [vmem:[%s4101_s1 + $0x28] sm:$0xff] }
 0x22f   : > { %1072 = vrot.lane.b32.xlu1 %v4454_v12, %s2100_s26  ;;  %1221 = vrot.lane.b32.xlu0 %v2718_v14, %s2101_s27  ;;  %v1396_v14 = vsel %vm1364_vm5, %v1363_v45, %v3191_v39  ;;  %v1573_v39 = vld [vmem:[%s4101_s1 + $0x58] sm:$0xff]  ;;  %v1302_v52 = vsel %vm1298_vm3, %v1269_v3, %v4459_v16  ;;  %v1571_v45 = vld [vmem:[%s4101_s1 + $0x48] sm:$0xff]  ;;  %v1272_v44 = vsel %vm1265_vm2, %v2062_v56, %v4467_v60  ;;  %v4468_v16 = vld [vmem:[#allocation80_spill] sm:$0xff] }
 0x230   : > { %v987_v29 = vpop.permute.xlu2 %986  ;;  %1971 = vmatpush.msra.mxu2 %v1573_v39  ;;  %1972 = vmatpush.msra.mxu3 %v1573_v39  ;;  %v1335_v12 = vsel %vm1331_vm4, %v1302_v52, %v4462_v19  ;;  %v1568_v3 = vld [vmem:[%s4101_s1 + $0x30] sm:$0xff]  ;;  %v4469_v52 = vld [vmem:[#allocation89_spill] sm:$0xff] }
 0x231   : > { %v967_v23 = vpop.permute.xlu1 %966  ;;  %v3583_v6 = vsel %vm1430_vm7, %v1408_v35, %v987_v29  ;;  %v931_v53 = vpop.permute.xlu0 %930  ;;  %1967 = vmatpush.msra.mxu1 %v1574_v2  ;;  %1586 = vmatpush.msra.mxu0 %v1573_v39  ;;  %v4465_v35 = vld [vmem:[#allocation139_spill] sm:$0xff]  ;;  %v1570_v2 = vld [vmem:[%s4101_s1 + $0x40] sm:$0xff]  ;;  %v4478_v60 = vld [vmem:[#allocation64_spill] sm:$0xff] }
 0x232   : > { %v3589_v40 = vsel %vm1430_vm7, %v1398_v43, %v967_v23  ;;  %v3592_v32 = vsel %vm1397_vm6, %v1396_v14, %v931_v53  ;;  %1974 = vmatpush.msra.mxu2 %v1572_v54  ;;  %v1368_v29 = vsel %vm1364_vm5, %v1335_v12, %v4465_v35  ;;  %1975 = vmatpush.msra.mxu3 %v1572_v54  ;;  %v4472_v12 = vld [vmem:[#allocation118_spill] sm:$0xff] }
 0x233   : > { %v1401_v14 = vsel %vm1397_vm6, %v1368_v29, %v3165_v1  ;;  %1970 = vmatpush.msra.mxu1 %v1573_v39  ;;  %1587 = vmatpush.msra.mxu0 %v1572_v54  ;;  %v4476_v29 = vld [vmem:[#allocation141_spill] sm:$0xff] }
 0x234   : > { %1977 = vmatpush.msra.mxu2 %v1571_v45  ;;  %1978 = vmatpush.msra.mxu3 %v1571_v45 }
 0x235   : > { %1973 = vmatpush.msra.mxu1 %v1572_v54  ;;  %1588 = vmatpush.msra.mxu0 %v1571_v45  ;;  %v1305_v54 = vsel %vm1298_vm3, %v1272_v44, %v4468_v16 }
 0x236   : > { %1173 = vrot.lane.b32.xlu2 %v4461_v58, %s2101_s27  ;;  %1980 = vmatpush.msra.mxu2 %v1570_v2  ;;  %v4471_v58 = vld [vmem:[#allocation117_spill] sm:$0xff] }
 0x237   : > { %1020 = vrot.lane.b32.xlu1 %v2058_v41, %s2099_s25  ;;  %1004 = vrot.lane.b32.xlu0 %v3402_v28, %s2099_s25  ;;  %v1400_v41 = vsel %vm1397_vm6, %v1367_v38, %v3203_v50  ;;  %v1569_v50 = vld [vmem:[%s4101_s1 + $0x38] sm:$0xff]  ;;  %v1338_v19 = vsel %vm1331_vm4, %v1305_v54, %v4471_v58  ;;  %v4475_v38 = vld [vmem:[#allocation132_spill] sm:$0xff]  ;;  %v2063_v54 = vld [vmem:[%s2146_s19 + $0x80] sm:$0xff] }
 0x238   : > { %v993_v43 = vpop.permute.xlu2 %992  ;;  %1981 = vmatpush.msra.mxu3 %v1570_v2  ;;  %1983 = vmatpush.msra.mxu2 %v1569_v50  ;;  %v4480_v58 = vld [vmem:[#allocation68_spill] sm:$0xff] }
 0x239   : > { %v973_v28 = vpop.permute.xlu1 %972  ;;  %v3632_v23 = vsel %vm1430_vm7, %v3310_v27, %v993_v43  ;;  %v971_v53 = vpop.permute.xlu0 %970  ;;  %v2061_v27 = vld [vmem:[%s2146_s19 + $0x38] sm:$0xff]  ;;  %1976 = vmatpush.msra.mxu1 %v1571_v45  ;;  %1589 = vmatpush.msra.mxu0 %v1570_v2  ;;  %v4474_v45 = vld [vmem:[#allocation47_spill] sm:$0xff]  ;;  %v1371_v43 = vsel %vm1364_vm5, %v1338_v19, %v4476_v29 }
 0x23a   : > { %v3638_v33 = vsel %vm1430_vm7, %v1401_v14, %v973_v28  ;;  %v3641_v1 = vsel %vm1430_vm7, %v1400_v41, %v971_v53  ;;  %v1271_v39 = vsel %vm1265_vm2, %v2061_v27, %v4466_v59  ;;  %1984 = vmatpush.msra.mxu3 %v1569_v50  ;;  %1986 = vmatpush.msra.mxu2 %v1568_v3  ;;  %v1566_v59 = vld [vmem:[%s4101_s1 + $0x20] sm:$0xff]  ;;  %v4485_v29 = vld [vmem:[#allocation123_spill] sm:$0xff] }
 0x23b   : > { %v1304_v8 = vsel %vm1298_vm3, %v1271_v39, %v4469_v52  ;;  %v1404_v41 = vsel %vm1397_vm6, %v1371_v43, %v3177_v24  ;;  %1979 = vmatpush.msra.mxu1 %v1570_v2  ;;  %1590 = vmatpush.msra.mxu0 %v1569_v50  ;;  %v1565_v24 = vld [vmem:[%s4101_s1 + $0x18] sm:$0xff]  ;;  %v4477_v2 = vld [vmem:[#allocation4_spill] sm:$0xff]  ;;  %v4479_v52 = vld [vmem:[#allocation43_spill] sm:$0xff] }
 0x23c   : > { %v1337_v31 = vsel %vm1331_vm4, %v1304_v8, %v4472_v12  ;;  %1987 = vmatpush.msra.mxu3 %v1568_v3  ;;  %1989 = vmatpush.msra.mxu2 %v1567_v26  ;;  %v1277_v8 = vsel %vm1265_vm2, %v2063_v54, %v4479_v52  ;;  %v4481_v12 = vld [vmem:[#allocation86_spill] sm:$0xff] }
 0x23d   : > { %v1370_v35 = vsel %vm1364_vm5, %v1337_v31, %v4475_v38  ;;  %1982 = vmatpush.msra.mxu1 %v1569_v50  ;;  %1591 = vmatpush.msra.mxu0 %v1568_v3  ;;  %v1563_v50 = vld [vmem:[%s4101_s1 + $0x8] sm:$0xff]  ;;  %v4484_v38 = vld [vmem:[#allocation122_spill] sm:$0xff] }
 0x23e   : > { %1122 = vrot.lane.b32.xlu2 %v4470_v62, %s2100_s26  ;;  %v1403_v28 = vsel %vm1397_vm6, %v1370_v35, %v3221_v37  ;;  %1990 = vmatpush.msra.mxu3 %v1567_v26  ;;  %v1564_v37 = vld [vmem:[%s4101_s1 + $0x10] sm:$0xff] }
 0x23f   : > { %1106 = vrot.lane.b32.xlu1 %v4473_v49, %s2100_s26  ;;  %1189 = vrot.lane.b32.xlu0 %v4474_v45, %s2101_s27  ;;  %v2064_v62 = vld [vmem:[%s2146_s19 + $0x90] sm:$0xff]  ;;  %v4482_v49 = vld [vmem:[#allocation93_spill] sm:$0xff] }
 0x240   : > { %v3676_v14 = vpop.permute.xlu2 %998  ;;  %1992 = vmatpush.msra.mxu2 %v1566_v59  ;;  %1993 = vmatpush.msra.mxu3 %v1566_v59  ;;  %v1278_v19 = vsel %vm1265_vm2, %v2064_v62, %v4480_v58  ;;  %v1310_v45 = vsel %vm1298_vm3, %v1277_v8, %v4482_v49 }
 0x241   : > { %v979_v53 = vpop.permute.xlu1 %978  ;;  %v977_v27 = vpop.permute.xlu0 %976  ;;  %1985 = vmatpush.msra.mxu1 %v1568_v3  ;;  %1592 = vmatpush.msra.mxu0 %v1567_v26  ;;  %v1311_v31 = vsel %vm1298_vm3, %v1278_v19, %v4481_v12  ;;  %v1343_v43 = vsel %vm1331_vm4, %v1310_v45, %v4485_v29  ;;  %v4490_v19 = vld [vmem:[#allocation46_spill] sm:$0xff]  ;;  %v4493_v45 = vld [vmem:[#allocation63_spill] sm:$0xff] }
 0x242   : > { %v3686_v39 = vsel %vm1430_vm7, %v1404_v41, %v979_v53  ;;  %v3689_v56 = vsel %vm1430_vm7, %v1403_v28, %v977_v27  ;;  %1995 = vmatpush.msra.mxu2 %v1565_v24  ;;  %1996 = vmatpush.msra.mxu3 %v1565_v24  ;;  %v1344_v35 = vsel %vm1331_vm4, %v1311_v31, %v4484_v38  ;;  %v2065_v41 = vld [vmem:[%s2146_s19 + $0x120] sm:$0xff]  ;;  %v4487_v53 = vld [vmem:[#allocation40_spill] sm:$0xff] }
 0x243   : > { %1988 = vmatpush.msra.mxu1 %v1567_v26  ;;  %1593 = vmatpush.msra.mxu0 %v1566_v59  ;;  %v4483_v26 = vld [vmem:[#allocation98_spill] sm:$0xff]  ;;  %v1376_v27 = vsel %vm1364_vm5, %v1343_v43, %v4487_v53  ;;  %v1447_v43 = vsel %vm1430_vm7, %v3352_v22, %v3676_v14  ;;  %v4498_v14 = vld [vmem:[#allocation37_spill] sm:$0xff] }
 0x244   : > { %1998 = vmatpush.msra.mxu2 %v1564_v37  ;;  %1999 = vmatpush.msra.mxu3 %v1564_v37  ;;  %v4486_v28 = vld [vmem:[#allocation14_spill] sm:$0xff]  ;;  %v1409_v54 = vsel %vm1397_vm6, %v1376_v27, %v3263_v20 }
 0x245   : > { %1991 = vmatpush.msra.mxu1 %v1566_v59  ;;  %1594 = vmatpush.msra.mxu0 %v1565_v24  ;;  %v4488_v59 = vld [vmem:[#allocation144_spill] sm:$0xff]  ;;  %v4497_v22 = vld [vmem:[#allocation54_spill] sm:$0xff] }
 0x246   : > { %1074 = vrot.lane.b32.xlu2 %v4477_v2, %s2100_s26  ;;  %2001 = vmatpush.msra.mxu2 %v1563_v50 }
 0x247   : > { %1223 = vrot.lane.b32.xlu1 %v2740_v55, %s2101_s27  ;;  %1207 = vrot.lane.b32.xlu0 %v4478_v60, %s2101_s27  ;;  %v1562_v55 = vld [vmem:[%s4101_s1] sm:$0xff] }
 0x248   : > { %v3706_v44 = vpop.permute.xlu2 %1100  ;;  %2002 = vmatpush.msra.mxu3 %v1563_v50  ;;  %2004 = vmatpush.msra.mxu2 %v1562_v55 }
 0x249   : > { %v3708_v3 = vpop.permute.xlu1 %984  ;;  %v3710_v16 = vpop.permute.xlu0 %982  ;;  %1994 = vmatpush.msra.mxu1 %v1565_v24  ;;  %1595 = vmatpush.msra.mxu0 %v1564_v37  ;;  %v1377_v24 = vsel %vm1364_vm5, %v1344_v35, %v4488_v59 }
 0x24a   : > { %2005 = vmatpush.msra.mxu3 %v1562_v55  ;;  %v1410_v60 = vsel %vm1397_vm6, %v1377_v24, %v3201_v48  ;;  %v4491_v48 = vld [vmem:[#allocation38_spill] sm:$0xff] }
 0x24b   : > { %1997 = vmatpush.msra.mxu1 %v1564_v37  ;;  %1596 = vmatpush.msra.mxu0 %v1563_v50  ;;  %v4489_v37 = vld [vmem:[#allocation24_spill] sm:$0xff] }
 0x24d   : > { %2000 = vmatpush.msra.mxu1 %v1563_v50  ;;  %1597 = vmatpush.msra.mxu0 %v1562_v55 }
 0x24e   : > { %1022 = vrot.lane.b32.xlu2 %v4483_v26, %s2099_s25  ;;  %v4494_v26 = vld [vmem:[#allocation128_spill] sm:$0xff] }
 0x24f   : > { %1006 = vrot.lane.b32.xlu1 %v2065_v41, %s2099_s25  ;;  %1090 = vrot.lane.b32.xlu0 %v4486_v28, %s2100_s26  ;;  %v1480_v28 = vsel %vm1463_vm8, %v1447_v43, %v3706_v44  ;;  %v2066_v44 = vld [vmem:[%s2146_s19 + $0x188] sm:$0xff] }
 0x250   : > { %v1218_v2 = vpop.permute.xlu2 %1217  ;;  %2003 = vmatpush.msra.mxu1 %v1562_v55  ;;  %v4492_v55 = vld [vmem:[#allocation146_spill] sm:$0xff] }
 0x251   : > { %v991_v52 = vpop.permute.xlu1 %990  ;;  %v989_v8 = vpop.permute.xlu0 %988 }
 0x252   : > { %v3744_v62 = vsel %vm1430_vm7, %v1410_v60, %v991_v52  ;;  %v3747_v58 = vsel %vm1430_vm7, %v1409_v54, %v989_v8  ;;  %v2067_v8 = vld [vmem:[%s2146_s19 + $0x60] sm:$0xff] }
 0x256   : > { %1108 = vrot.lane.b32.xlu2 %v4489_v37, %s2100_s26  ;;  %v4499_v37 = vld [vmem:[#allocation39_spill] sm:$0xff] }
 0x257   : > { %1191 = vrot.lane.b32.xlu1 %v4490_v19, %s2101_s27  ;;  %1175 = vrot.lane.b32.xlu0 %v4491_v48, %s2101_s27  ;;  %v1274_v19 = vsel %vm1265_vm2, %v2067_v8, %v4499_v37  ;;  %v2068_v37 = vld [vmem:[%s2146_s19 + $0x68] sm:$0xff] }
 0x258   : > { %v1017_v20 = vpop.permute.xlu2 %1016 }
 0x259   : > { %v997_v12 = vpop.permute.xlu1 %996  ;;  %v995_v31 = vpop.permute.xlu0 %994 }
 0x25a   : > { %v3757_v49 = vsel %vm1430_vm7, %v3224_v5, %v997_v12  ;;  %v3761_v50 = vsel %vm1430_vm7, %v3307_v17, %v995_v31  ;;  %v4495_v5 = vld [vmem:[#allocation13_spill] sm:$0xff]  ;;  %v4496_v17 = vld [vmem:[#allocation3_spill] sm:$0xff]  ;;  %v4501_v12 = vld [vmem:[#allocation120_spill] sm:$0xff] }
 0x25e   : > { %1225 = vrot.lane.b32.xlu2 %v4492_v55, %s2101_s27  ;;  %v4502_v55 = vld [vmem:[#allocation134_spill] sm:$0xff] }
 0x25f   : > { %1209 = vrot.lane.b32.xlu1 %v4493_v45, %s2101_s27  ;;  %1124 = vrot.lane.b32.xlu0 %v4494_v26, %s2100_s26  ;;  %v4503_v26 = vld [vmem:[#allocation71_spill] sm:$0xff] }
 0x260   : > { %v1103_v38 = vpop.permute.xlu2 %1102 }
 0x261   : > { %v1015_v35 = vpop.permute.xlu1 %1014  ;;  %v1001_v29 = vpop.permute.xlu0 %1000 }
 0x266   : > { %1008 = vrot.lane.b32.xlu2 %v3454_v46, %s2099_s25  ;;  %v1455_v46 = vsel %vm1430_vm7, %v3304_v36, %v1015_v35 }
 0x267   : > { %1092 = vrot.lane.b32.xlu1 %v4495_v5, %s2100_s26  ;;  %1076 = vrot.lane.b32.xlu0 %v4496_v17, %s2100_s26  ;;  %v4504_v5 = vld [vmem:[#allocation127_spill] sm:$0xff] }
 0x268   : > { %v1220_v41 = vpop.permute.xlu2 %1219  ;;  %v4505_v17 = vld [vmem:[#allocation23_spill] sm:$0xff] }
 0x269   : > { %v1202_v53 = vpop.permute.xlu1 %1201  ;;  %v1117_v27 = vpop.permute.xlu0 %1116 }
 0x26a   : > { %v1488_v59 = vsel %vm1463_vm8, %v1455_v46, %v1117_v27  ;;  %v1513_v24 = vsel %vm1496_vm9, %v1480_v28, %v1202_v53 }
 0x26b   : > { %1939 = vmatmul.msk.f32.vlgmr.msra.gmra.mxu2 %vm1529_vm10, %v1513_v24  ;;  %v1521_v60 = vsel %vm1496_vm9, %v1488_v59, %v1218_v2  ;;  %v4500_v2 = vld [vmem:[#allocation91_spill] sm:$0xff] }
 0x26c   : > { %1947 = vmatmul.msk.f32.vlgmr.msra.gmra.mxu3 %vm1529_vm10, %v1521_v60  ;;  %v1307_v48 = vsel %vm1298_vm3, %v1274_v19, %v4500_v2  ;;  %v4506_v60 = vld [vmem:[#allocation12_spill] sm:$0xff]  ;;  %v4508_v19 = vld [vmem:[#allocation62_spill] sm:$0xff]  ;;  %v258_v2 = vld [vmem:[%s2146_s19 + $0x198] sm:$0xff] }
 0x26d   : > { %v1340_v31 = vsel %vm1331_vm4, %v1307_v48, %v4501_v12  ;;  %v4510_v48 = vld [vmem:[#allocation119_spill] sm:$0xff] }
 0x26e   : > { %1193 = vrot.lane.b32.xlu2 %v4497_v22, %s2101_s27  ;;  %v1373_v45 = vsel %vm1364_vm5, %v1340_v31, %v4502_v55  ;;  %v4511_v31 = vld [vmem:[#allocation36_spill] sm:$0xff]  ;;  %v4512_v55 = vld [vmem:[#allocation142_spill] sm:$0xff] }
 0x26f   : > { %1177 = vrot.lane.b32.xlu1 %v4498_v14, %s2101_s27  ;;  %1024 = vrot.lane.b32.xlu0 %v2066_v44, %s2099_s25  ;;  %v1406_v35 = vsel %vm1397_vm6, %v1373_v45, %v3242_v30  ;;  %v1456_v14 = vsel %vm1430_vm7, %v3490_v51, %v1017_v20  ;;  %v3842_v51 = vld [vmem:[%s2146_s19 + $0x1a0] sm:$0xff]  ;;  %v4509_v20 = vld [vmem:[#allocation83_spill] sm:$0xff]  ;;  %v1063_v45 = vrot.slane %v258_v2, 1 }
 0x270   : > { %v3793_v36 = vpop.permute.xlu2 %1002  ;;  %v1439_v43 = vsel %vm1430_vm7, %v1406_v35, %v3710_v16  ;;  %v1448_v16 = vsel %vm1430_vm7, %v3349_v13, %v1001_v29  ;;  %v4513_v35 = vld [vmem:[#allocation147_spill] sm:$0xff] }
 0x271   : > { %v1085_v54 = vpop.permute.xlu1 %1084  ;;  %v1069_v52 = vpop.permute.xlu0 %1068 }
 0x272   : > { %v1472_v46 = vsel %vm1463_vm8, %v1439_v43, %v1085_v54  ;;  %v1464_v53 = vsel %vm1463_vm8, %v3589_v40, %v1069_v52  ;;  %v4507_v40 = vld [vmem:[#allocation8_spill] sm:$0xff]  ;;  %v1481_v52 = vsel %vm1463_vm8, %v1448_v16, %v1103_v38  ;;  %v1164_v16 = vrot.slane %v258_v2, 2 }
 0x276   : > { %1211 = vrot.lane.b32.xlu2 %v4503_v26, %s2101_s27  ;;  %v1064_v26 = vrot.slane %v3842_v51, 1 }
 0x277   : > { %1126 = vrot.lane.b32.xlu1 %v4504_v5, %s2100_s26  ;;  %1110 = vrot.lane.b32.xlu0 %v4505_v17, %s2100_s26 }
 0x278   : > { %v1188_v28 = vpop.permute.xlu2 %1187 }
 0x279   : > { %v1186_v27 = vpop.permute.xlu1 %1185  ;;  %v1170_v59 = vpop.permute.xlu0 %1169 }
 0x27a   : > { %v1497_v24 = vsel %vm1496_vm9, %v1464_v53, %v1170_v59  ;;  %v1505_v30 = vsel %vm1496_vm9, %v1472_v46, %v1186_v27 }
 0x27b   : > { %1923 = vmatmul.msk.f32.vlgmr.msra.gmra.mxu0 %vm1529_vm10, %v1497_v24  ;;  %1931 = vmatmul.msk.f32.vlgmr.msra.gmra.mxu1 %vm1529_vm10, %v1505_v30  ;;  %v1065_v24 = vsel %vm309_vm0, %v1063_v45, %v1064_v26  ;;  %v4515_v30 = vld [vmem:[#allocation53_spill] sm:$0xff]  ;;  %v4521_v45 = vld [vmem:[#allocation42_spill] sm:$0xff] }
 0x27e   : > { %1094 = vrot.lane.b32.xlu2 %v4506_v60, %s2100_s26  ;;  %v1165_v60 = vrot.slane %v3842_v51, 2 }
 0x27f   : > { %1078 = vrot.lane.b32.xlu1 %v4507_v40, %s2100_s26  ;;  %1227 = vrot.lane.b32.xlu0 %v3147_v11, %s2101_s27  ;;  %v1275_v11 = vsel %vm1265_vm2, %v2068_v37, %v4508_v19 }
 0x280   : > { %v1206_v22 = vpop.permute.xlu2 %1205  ;;  %v1308_v38 = vsel %vm1298_vm3, %v1275_v11, %v4509_v20  ;;  %v4518_v20 = vld [vmem:[#allocation17_spill] sm:$0xff] }
 0x281   : > { %v1204_v44 = vpop.permute.xlu1 %1203  ;;  %v1119_v54 = vpop.permute.xlu0 %1118  ;;  %v1341_v12 = vsel %vm1331_vm4, %v1308_v38, %v4510_v48 }
 0x282   : > { %v1489_v13 = vsel %vm1463_vm8, %v1456_v14, %v1119_v54  ;;  %v1514_v29 = vsel %vm1496_vm9, %v1481_v52, %v1204_v44  ;;  %v1166_v54 = vsel %vm486_vm1, %v1164_v16, %v1165_v60  ;;  %v4516_v52 = vld [vmem:[#allocation7_spill] sm:$0xff] }
 0x283   : > { %1940 = vmatmul.msk.f32.gmra.mxu2 %vm1529_vm10, %v1514_v29  ;;  %v1522_v8 = vsel %vm1496_vm9, %v1489_v13, %v1220_v41  ;;  %v1374_v41 = vsel %vm1364_vm5, %v1341_v12, %v4512_v55  ;;  %v4517_v13 = vld [vmem:[#allocation70_spill] sm:$0xff]  ;;  %v260_v55 = vld [vmem:[%s2146_s19 + $0x1a8] sm:$0x3] }
 0x284   : > { %1948 = vmatmul.msk.f32.gmra.mxu3 %vm1529_vm10, %v1522_v8  ;;  %v1407_v5 = vsel %vm1397_vm6, %v1374_v41, %v4513_v35  ;;  %v4519_v41 = vld [vmem:[#allocation27_spill] sm:$0xff]  ;;  %v1167_v35 = vrot.slane %v260_v55, 2 }
 0x285   : > { %v1440_v43 = vsel %vm1430_vm7, %v1407_v5, %v3708_v3 }
 0x286   : > { %1179 = vrot.lane.b32.xlu2 %v4511_v31, %s2101_s27 }
 0x287   : > { %1026 = vrot.lane.b32.xlu1 %v258_v2, %s2099_s25  ;;  %1010 = vrot.lane.b32.xlu0 %v3448_v4, %s2099_s25  ;;  %v4514_v4 = vld [vmem:[#allocation22_spill] sm:$0xff] }
 0x288   : > { %v1089_v17 = vpop.permute.xlu2 %1088  ;;  %v2069_v2 = vld [vmem:[%s2146_s19 + $0x140] sm:$0xff] }
 0x289   : > { %v1087_v46 = vpop.permute.xlu1 %1086  ;;  %v1071_v53 = vpop.permute.xlu0 %1070 }
 0x28a   : > { %v1473_v27 = vsel %vm1463_vm8, %v1440_v43, %v1087_v46  ;;  %v1465_v40 = vsel %vm1463_vm8, %v3434_v10, %v1071_v53  ;;  %v1449_v10 = vsel %vm1430_vm7, %v3245_v57, %v3793_v36  ;;  %v1168_v53 = vsel %vm486_vm1, %v1165_v60, %v1167_v35  ;;  %v4523_v60 = vld [vmem:[#allocation41_spill] sm:$0xff] }
 0x28b   : > { %v1506_v59 = vsel %vm1496_vm9, %v1473_v27, %v1188_v28 }
 0x28c   : > { %1932 = vmatmul.msk.f32.gmra.mxu1 %vm1529_vm10, %v1506_v59  ;;  %v4522_v59 = vld [vmem:[#allocation69_spill] sm:$0xff] }
 0x28e   : > { %1128 = vrot.lane.b32.xlu2 %v1065_v24, %s2100_s26  ;;  %v1474_v24 = vsel %vm1463_vm8, %v3583_v6, %v1089_v17 }
 0x28f   : > { %1112 = vrot.lane.b32.xlu1 %v4514_v4, %s2100_s26  ;;  %1195 = vrot.lane.b32.xlu0 %v4515_v30, %s2101_s27 }
 0x290   : > { %v1174_v3 = vpop.permute.xlu2 %1173 }
 0x291   : > { %v1172_v28 = vpop.permute.xlu1 %1171  ;;  %v1019_v14 = vpop.permute.xlu0 %1018 }
 0x292   : > { %v1498_v44 = vsel %vm1496_vm9, %v1465_v40, %v1172_v28  ;;  %v1457_v57 = vsel %vm1430_vm7, %v3487_v63, %v1019_v14  ;;  %v4520_v63 = vld [vmem:[#allocation52_spill] sm:$0xff]  ;;  %v4525_v28 = vld [vmem:[#allocation6_spill] sm:$0xff] }
 0x293   : > { %1924 = vmatmul.msk.f32.gmra.mxu0 %vm1529_vm10, %v1498_v44  ;;  %v4524_v40 = vld [vmem:[#allocation16_spill] sm:$0xff] }
 0x296   : > { %1080 = vrot.lane.b32.xlu2 %v4516_v52, %s2100_s26 }
 0x297   : > { %1229 = vrot.lane.b32.xlu1 %v1166_v54, %s2101_s27  ;;  %1213 = vrot.lane.b32.xlu0 %v4517_v13, %s2101_s27 }
 0x298   : > { %v1123_v29 = vpop.permute.xlu2 %1122 }
 0x299   : > { %v1121_v8 = vpop.permute.xlu1 %1120  ;;  %v1105_v37 = vpop.permute.xlu0 %1104 }
 0x29a   : > { %v1482_v19 = vsel %vm1463_vm8, %v1449_v10, %v1105_v37  ;;  %v1490_v38 = vsel %vm1463_vm8, %v1457_v57, %v1121_v8  ;;  %v4526_v10 = vld [vmem:[#allocation59_spill] sm:$0xff] }
 0x29b   : > { %v1515_v11 = vsel %vm1496_vm9, %v1482_v19, %v1206_v22 }
 0x29c   : > { %1941 = vmatmul.msk.f32.gmra.mxu2 %vm1529_vm10, %v1515_v11 }
 0x29e   : > { %1028 = vrot.lane.b32.xlu2 %v3842_v51, %s2099_s25 }
 0x29f   : > { %1012 = vrot.lane.b32.xlu1 %v2069_v2, %s2099_s25  ;;  %1096 = vrot.lane.b32.xlu0 %v4518_v20, %s2100_s26 }
 0x2a0   : > { %v1075_v36 = vpop.permute.xlu2 %1074 }
 0x2a1   : > { %v1073_v48 = vpop.permute.xlu1 %1072  ;;  %v1222_v22 = vpop.permute.xlu0 %1221  ;;  %v1467_v19 = vsel %vm1463_vm8, %v3638_v33, %v1075_v36 }
 0x2a2   : > { %v1466_v12 = vsel %vm1463_vm8, %v3641_v1, %v1073_v48  ;;  %v1523_v31 = vsel %vm1496_vm9, %v1490_v38, %v1222_v22  ;;  %v1066_v1 = vrot.slane %v260_v55, 1 }
 0x2a3   : > { %1949 = vmatmul.msk.f32.gmra.mxu3 %vm1529_vm10, %v1523_v31  ;;  %v1499_v51 = vsel %vm1496_vm9, %v1466_v12, %v1174_v3 }
 0x2a4   : > { %1925 = vmatmul.msk.f32.gmra.mxu0 %vm1529_vm10, %v1499_v51  ;;  %v1067_v27 = vsel %vm309_vm0, %v1064_v26, %v1066_v1 }
 0x2a6   : > { %1114 = vrot.lane.b32.xlu2 %v4519_v41, %s2100_s26 }
 0x2a7   : > { %1197 = vrot.lane.b32.xlu1 %v4520_v63, %s2101_s27  ;;  %1181 = vrot.lane.b32.xlu0 %v4521_v45, %s2101_s27 }
 0x2a8   : > { %v1023_v46 = vpop.permute.xlu2 %1022 }
 0x2a9   : > { %v1021_v5 = vpop.permute.xlu1 %1020  ;;  %v1005_v43 = vpop.permute.xlu0 %1004  ;;  %v1459_v48 = vsel %vm1430_vm7, %v3534_v7, %v1023_v46 }
 0x2aa   : > { %v1458_v26 = vsel %vm1430_vm7, %v3346_v61, %v1021_v5  ;;  %v1450_v6 = vsel %vm1430_vm7, %v3394_v34, %v1005_v43 }
 0x2ab   : > { %v1491_v54 = vsel %vm1463_vm8, %v1458_v26, %v1123_v29 }
 0x2ae   : > { %1231 = vrot.lane.b32.xlu2 %v1168_v53, %s2101_s27 }
 0x2af   : > { %1215 = vrot.lane.b32.xlu1 %v4522_v59, %s2101_s27  ;;  %1130 = vrot.lane.b32.xlu0 %v1067_v27, %s2100_s26 }
 0x2b0   : > { %v1109_v3 = vpop.permute.xlu2 %1108 }
 0x2b1   : > { %v1107_v4 = vpop.permute.xlu1 %1106  ;;  %v1190_v30 = vpop.permute.xlu0 %1189 }
 0x2b2   : > { %v1507_v16 = vsel %vm1496_vm9, %v1474_v24, %v1190_v30  ;;  %v1483_v17 = vsel %vm1463_vm8, %v1450_v6, %v1107_v4 }
 0x2b3   : > { %1933 = vmatmul.msk.f32.gmra.mxu1 %vm1529_vm10, %v1507_v16 }
 0x2b6   : > { %1183 = vrot.lane.b32.xlu2 %v4523_v60, %s2101_s27 }
 0x2b7   : > { %1098 = vrot.lane.b32.xlu1 %v4524_v40, %s2100_s26  ;;  %1082 = vrot.lane.b32.xlu0 %v4525_v28, %s2100_s26  ;;  %s1957_s26 = sshll.u32 %s4532_s12, 8 }
 0x2b8   : > { %v1226_v13 = vpop.permute.xlu2 %1225  ;;  %s3981_s20 = scalar_lea.vmem %s4103_s3, %s1957_s26 }
 0x2b9   : > { %v1224_v14 = vpop.permute.xlu1 %1223  ;;  %v1208_v44 = vpop.permute.xlu0 %1207 }
 0x2ba   : > { %v1516_v61 = vsel %vm1496_vm9, %v1483_v17, %v1208_v44  ;;  %v1524_v52 = vsel %vm1496_vm9, %v1491_v54, %v1224_v14 }
 0x2bb   : > { %1942 = vmatmul.msk.f32.gmra.mxu2 %vm1529_vm10, %v1516_v61  ;;  %1950 = vmatmul.msk.f32.gmra.mxu3 %vm1529_vm10, %v1524_v52 }
 0x2bf   : > { %1199 = vrot.lane.b32.xlu0 %v4526_v10, %s2101_s27 }
 0x2c0   : > { %v1009_v37 = vpop.permute.xlu2 %1008 }
 0x2c1   : > { %v1007_v8 = vpop.permute.xlu1 %1006  ;;  %v1091_v34 = vpop.permute.xlu0 %1090  ;;  %v1452_v46 = vsel %vm1430_vm7, %v3266_v18, %v1009_v37 }
 0x2c2   : > { %v1475_v29 = vsel %vm1463_vm8, %v3747_v58, %v1091_v34  ;;  %v1451_v38 = vsel %vm1430_vm7, %v3391_v9, %v1007_v8 }
 0x2c3   : > { %v1484_v58 = vsel %vm1463_vm8, %v1451_v38, %v1109_v3 }
 0x2c8   : > { %v1194_v22 = vpop.permute.xlu2 %1193 }
 0x2c9   : > { %v1192_v11 = vpop.permute.xlu1 %1191  ;;  %v1176_v2 = vpop.permute.xlu0 %1175 }
 0x2ca   : > { %v1500_v20 = vsel %vm1496_vm9, %v1467_v19, %v1176_v2  ;;  %v1508_v57 = vsel %vm1496_vm9, %v1475_v29, %v1192_v11 }
 0x2cb   : > { %1926 = vmatmul.msk.f32.gmra.mxu0 %vm1529_vm10, %v1500_v20  ;;  %1934 = vmatmul.msk.f32.gmra.mxu1 %vm1529_vm10, %v1508_v57 }
 0x2d0   : > { %v1212_v63 = vpop.permute.xlu2 %1211 }
 0x2d1   : > { %v1210_v33 = vpop.permute.xlu1 %1209  ;;  %v1125_v36 = vpop.permute.xlu0 %1124 }
 0x2d2   : > { %v1492_v12 = vsel %vm1463_vm8, %v1459_v48, %v1125_v36  ;;  %v1517_v31 = vsel %vm1496_vm9, %v1484_v58, %v1210_v33 }
 0x2d3   : > { %1943 = vmatmul.msk.f32.gmra.mxu2 %vm1529_vm10, %v1517_v31  ;;  %v1525_v51 = vsel %vm1496_vm9, %v1492_v12, %v1226_v13 }
 0x2d4   : > { %1951 = vmatmul.msk.f32.gmra.mxu3 %vm1529_vm10, %v1525_v51 }
 0x2d8   : > { %v1095_v43 = vpop.permute.xlu2 %1094 }
 0x2d9   : > { %v1093_v55 = vpop.permute.xlu1 %1092  ;;  %v1077_v9 = vpop.permute.xlu0 %1076  ;;  %v1477_v20 = vsel %vm1463_vm8, %v3632_v23, %v1095_v43 }
 0x2da   : > { %v1476_v7 = vsel %vm1463_vm8, %v3744_v62, %v1093_v55  ;;  %v1468_v45 = vsel %vm1463_vm8, %v3484_v21, %v1077_v9  ;;  %v3969_v21 = vld [vmem:[%s4102_s2] ss:$0 sm:$0xff] }
 0x2db   : > { %v1509_v41 = vsel %vm1496_vm9, %v1476_v7, %v1194_v22 }
 0x2dc   : > { %1935 = vmatmul.msk.f32.gmra.mxu1 %vm1529_vm10, %v1509_v41 }
 0x2e0   : > { %v1180_v16 = vpop.permute.xlu2 %1179 }
 0x2e1   : > { %v1178_v35 = vpop.permute.xlu1 %1177  ;;  %v1025_v1 = vpop.permute.xlu0 %1024 }
 0x2e2   : > { %v1501_v5 = vsel %vm1496_vm9, %v1468_v45, %v1178_v35  ;;  %v1460_v18 = vsel %vm1430_vm7, %v3531_v0, %v1025_v1 }
 0x2e3   : > { %1927 = vmatmul.msk.f32.gmra.mxu0 %vm1529_vm10, %v1501_v5 }
 0x2e8   : > { %v1129_v34 = vpop.permute.xlu2 %1128 }
 0x2e9   : > { %v1127_v62 = vpop.permute.xlu1 %1126  ;;  %v1111_v53 = vpop.permute.xlu0 %1110 }
 0x2ea   : > { %v1485_v27 = vsel %vm1463_vm8, %v1452_v46, %v1111_v53  ;;  %v1493_v26 = vsel %vm1463_vm8, %v1460_v18, %v1127_v62 }
 0x2eb   : > { %v1518_v59 = vsel %vm1496_vm9, %v1485_v27, %v1212_v63 }
 0x2ec   : > { %1944 = vmatmul.msk.f32.gmra.mxu2 %vm1529_vm10, %v1518_v59 }
 0x2ee   : > { %v1647_v24 = vpop.f32.mrf.mxu2 }
 0x2ef   : > { %v1648_v4 = vadd.f32 %v3969_v21, %v1647_v24  ;;  %v1671_v30 = vpop.f32.mrf.mxu3 }
 0x2f0   : > { %v1672_v3 = vadd.f32 %v3969_v21, %v1671_v30  ;;  %v1081_v48 = vpop.permute.xlu2 %1080 }
 0x2f1   : > { %vm1711_vm11 = vcmp.ge.f32.partialorder %v1648_v4, 0.0  ;;  %v1743_v60 = vmul.f32 0.2, %v1648_v4  ;;  %v1079_v40 = vpop.permute.xlu1 %1078  ;;  %v1228_v28 = vpop.permute.xlu0 %1227 }
 0x2f2   : > { %vm1719_vm12 = vcmp.ge.f32.partialorder %v1672_v3, 0.0  ;;  %v1751_v6 = vmul.f32 0.2, %v1672_v3  ;;  %v1469_v0 = vsel %vm1463_vm8, %v3689_v56, %v1079_v40  ;;  %v1526_v17 = vsel %vm1496_vm9, %v1493_v26, %v1228_v28 }
 0x2f3   : > { %v1775_v14 = vsel %vm1711_vm11, %v1648_v4, %v1743_v60  ;;  %1952 = vmatmul.msk.f32.gmra.mxu3 %vm1529_vm10, %v1526_v17  ;;  %v1502_v44 = vsel %vm1496_vm9, %v1469_v0, %v1180_v16 }
 0x2f4   : > { %1807 = vst [vmem:[%s3981_s20 + $0x80] sm:$0xff] %v1775_v14  ;;  %v1783_v54 = vsel %vm1719_vm12, %v1672_v3, %v1751_v6  ;;  %1928 = vmatmul.msk.f32.gmra.mxu0 %vm1529_vm10, %v1502_v44  ;;  %v1470_v3 = vsel %vm1463_vm8, %v3686_v39, %v1081_v48 }
 0x2f5   : > { %1815 = vst [vmem:[%s3981_s20 + $0xc0] sm:$0xff] %v1783_v54 }
 0x2f8   : > { %v1599_v61 = vpop.f32.mrf.mxu0  ;;  %v1623_v52 = vpop.f32.mrf.mxu1 }
 0x2f9   : > { %v1600_v13 = vadd.f32 %v3969_v21, %v1599_v61  ;;  %v1624_v56 = vadd.f32 %v3969_v21, %v1623_v52  ;;  %v1027_v10 = vpop.permute.xlu1 %1026  ;;  %v1011_v8 = vpop.permute.xlu0 %1010 }
 0x2fa   : > { %v1461_v33 = vsel %vm1430_vm7, %v3388_v15, %v1027_v10  ;;  %v1453_v12 = vsel %vm1430_vm7, %v3440_v47, %v1011_v8  ;;  %v1029_v46 = vpop.permute.xlu2 %1028 }
 0x2fb   : > { %vm1695_vm13 = vcmp.ge.f32.partialorder %v1600_v13, 0.0  ;;  %v1727_v37 = vmul.f32 0.2, %v1600_v13  ;;  %vm1703_vm14 = vcmp.ge.f32.partialorder %v1624_v56, 0.0  ;;  %v1735_v19 = vmul.f32 0.2, %v1624_v56 }
 0x2fc   : > { %v1494_v7 = vsel %vm1463_vm8, %v1461_v33, %v1129_v34  ;;  %v1462_v39 = vsel %vm1430_vm7, %v3592_v32, %v1029_v46 }
 0x2fd   : > { %v1759_v29 = vsel %vm1695_vm13, %v1600_v13, %v1727_v37  ;;  %v1767_v11 = vsel %vm1703_vm14, %v1624_v56, %v1735_v19 }
 0x2fe   : > { %1791 = vst [vmem:[%s3981_s20] sm:$0xff] %v1759_v29 }
 0x2ff   : > { %1799 = vst [vmem:[%s3981_s20 + $0x40] sm:$0xff] %v1767_v11 }
 0x301   : > { %v1113_v2 = vpop.permute.xlu1 %1112  ;;  %v1196_v57 = vpop.permute.xlu0 %1195 }
 0x302   : > { %v1510_v38 = vsel %vm1496_vm9, %v1477_v20, %v1196_v57  ;;  %v1486_v23 = vsel %vm1463_vm8, %v1453_v12, %v1113_v2  ;;  %v1115_v30 = vpop.permute.xlu2 %1114 }
 0x303   : > { %1936 = vmatmul.msk.f32.gmra.mxu1 %vm1529_vm10, %v1510_v38 }
 0x306   : > { %v1650_v36 = vpop.f32.mrf.mxu2 }
 0x307   : > { %v1651_v58 = vadd.f32 %v3969_v21, %v1650_v36  ;;  %v1674_v22 = vpop.f32.mrf.mxu3 }
 0x308   : > { %v1675_v31 = vadd.f32 %v3969_v21, %v1674_v22 }
 0x309   : > { %vm1712_vm15 = vcmp.ge.f32.partialorder %v1651_v58, 0.0  ;;  %v1744_v51 = vmul.f32 0.2, %v1651_v58  ;;  %v1230_v55 = vpop.permute.xlu1 %1229  ;;  %v1626_v9 = vpop.f32.mrf.mxu1 }
 0x30a   : > { %vm1720_vm0 = vcmp.ge.f32.partialorder %v1675_v31, 0.0  ;;  %v1752_v15 = vmul.f32 0.2, %v1675_v31  ;;  %v1627_v41 = vadd.f32 %v3969_v21, %v1626_v9  ;;  %v1214_v63 = vpop.permute.xlu0 %1213  ;;  %v1527_v47 = vsel %vm1496_vm9, %v1494_v7, %v1230_v55  ;;  %v1232_v0 = vpop.permute.xlu2 %1231 }
 0x30b   : > { %v1776_v45 = vsel %vm1712_vm15, %v1651_v58, %v1744_v51  ;;  %v1519_v35 = vsel %vm1496_vm9, %v1486_v23, %v1214_v63  ;;  %1953 = vmatmul.msk.f32.gmra.mxu3 %vm1529_vm10, %v1527_v47 }
 0x30c   : > { %1808 = vst [vmem:[%s3981_s20 + $0x88] sm:$0xff] %v1776_v45  ;;  %v1784_v1 = vsel %vm1720_vm0, %v1675_v31, %v1752_v15  ;;  %vm1704_vm1 = vcmp.ge.f32.partialorder %v1627_v41, 0.0  ;;  %v1736_v5 = vmul.f32 0.2, %v1627_v41  ;;  %1945 = vmatmul.msk.f32.gmra.mxu2 %vm1529_vm10, %v1519_v35 }
 0x30d   : > { %1816 = vst [vmem:[%s3981_s20 + $0xc8] sm:$0xff] %v1784_v1 }
 0x30e   : > { %v1768_v43 = vsel %vm1704_vm1, %v1627_v41, %v1736_v5 }
 0x30f   : > { %1800 = vst [vmem:[%s3981_s20 + $0x48] sm:$0xff] %v1768_v43 }
 0x310   : > { %v1602_v62 = vpop.f32.mrf.mxu0 }
 0x311   : > { %v1603_v53 = vadd.f32 %v3969_v21, %v1602_v62  ;;  %v1013_v27 = vpop.permute.xlu1 %1012 }
 0x312   : > { %v1097_v59 = vpop.permute.xlu0 %1096  ;;  %v1454_v28 = vsel %vm1430_vm7, %v3437_v25, %v1013_v27  ;;  %v1184_v29 = vpop.permute.xlu2 %1183 }
 0x313   : > { %vm1696_vm2 = vcmp.ge.f32.partialorder %v1603_v53, 0.0  ;;  %v1728_v24 = vmul.f32 0.2, %v1603_v53  ;;  %v1478_v16 = vsel %vm1463_vm8, %v3761_v50, %v1097_v59  ;;  %v1487_v17 = vsel %vm1463_vm8, %v1454_v28, %v1115_v30 }
 0x315   : > { %v1760_v4 = vsel %vm1696_vm2, %v1603_v53, %v1728_v24 }
 0x316   : > { %1792 = vst [vmem:[%s3981_s20 + $0x8] sm:$0xff] %v1760_v4 }
 0x319   : > { %v1198_v18 = vpop.permute.xlu1 %1197 }
 0x31a   : > { %v1182_v26 = vpop.permute.xlu0 %1181  ;;  %v1511_v60 = vsel %vm1496_vm9, %v1478_v16, %v1198_v18 }
 0x31b   : > { %v1503_v40 = vsel %vm1496_vm9, %v1470_v3, %v1182_v26  ;;  %1937 = vmatmul.msk.f32.gmra.mxu1 %vm1529_vm10, %v1511_v60 }
 0x31c   : > { %1929 = vmatmul.msk.f32.gmra.mxu0 %vm1529_vm10, %v1503_v40 }
 0x31f   : > { %v1653_v6 = vpop.f32.mrf.mxu2 }
 0x320   : > { %v1654_v50 = vadd.f32 %v3969_v21, %v1653_v6 }
 0x321   : > { %v1216_v14 = vpop.permute.xlu1 %1215  ;;  %v1605_v44 = vpop.f32.mrf.mxu0 }
 0x322   : > { %vm1713_vm3 = vcmp.ge.f32.partialorder %v1654_v50, 0.0  ;;  %v1745_v54 = vmul.f32 0.2, %v1654_v50  ;;  %v1606_v61 = vadd.f32 %v3969_v21, %v1605_v44  ;;  %v1131_v52 = vpop.permute.xlu0 %1130  ;;  %v1520_v25 = vsel %vm1496_vm9, %v1487_v17, %v1216_v14 }
 0x323   : > { %v1495_v13 = vsel %vm1463_vm8, %v1462_v39, %v1131_v52  ;;  %1946 = vmatmul.msk.f32.gmra.mxu2 %vm1529_vm10, %v1520_v25 }
 0x324   : > { %v1777_v56 = vsel %vm1713_vm3, %v1654_v50, %v1745_v54  ;;  %vm1697_vm4 = vcmp.ge.f32.partialorder %v1606_v61, 0.0  ;;  %v1729_v32 = vmul.f32 0.2, %v1606_v61  ;;  %v1528_v10 = vsel %vm1496_vm9, %v1495_v13, %v1232_v0 }
 0x325   : > { %1809 = vst [vmem:[%s3981_s20 + $0x90] sm:$0xff] %v1777_v56  ;;  %1954 = vmatmul.msk.f32.gmra.mxu3 %vm1529_vm10, %v1528_v10 }
 0x326   : > { %v1761_v8 = vsel %vm1697_vm4, %v1606_v61, %v1729_v32  ;;  %v1677_v34 = vpop.f32.mrf.mxu3 }
 0x327   : > { %1793 = vst [vmem:[%s3981_s20 + $0x10] sm:$0xff] %v1761_v8  ;;  %v1678_v37 = vadd.f32 %v3969_v21, %v1677_v34 }
 0x329   : > { %vm1721_vm5 = vcmp.ge.f32.partialorder %v1678_v37, 0.0  ;;  %v1753_v19 = vmul.f32 0.2, %v1678_v37  ;;  %v1099_v38 = vpop.permute.xlu1 %1098 }
 0x32a   : > { %v1083_v11 = vpop.permute.xlu0 %1082  ;;  %v1479_v36 = vsel %vm1463_vm8, %v3757_v49, %v1099_v38 }
 0x32b   : > { %v1785_v2 = vsel %vm1721_vm5, %v1678_v37, %v1753_v19  ;;  %v1471_v20 = vsel %vm1463_vm8, %v3528_v42, %v1083_v11 }
 0x32c   : > { %1817 = vst [vmem:[%s3981_s20 + $0xd0] sm:$0xff] %v1785_v2  ;;  %v1504_v57 = vsel %vm1496_vm9, %v1471_v20, %v1184_v29 }
 0x32d   : > { %1930 = vmatmul.msk.f32.gmra.mxu0 %vm1529_vm10, %v1504_v57 }
 0x330   : > { %v1629_v48 = vpop.f32.mrf.mxu1 }
 0x331   : > { %v1630_v33 = vadd.f32 %v3969_v21, %v1629_v48 }
 0x332   : > { %v1200_v58 = vpop.permute.xlu0 %1199 }
 0x333   : > { %vm1705_vm6 = vcmp.ge.f32.partialorder %v1630_v33, 0.0  ;;  %v1737_v22 = vmul.f32 0.2, %v1630_v33  ;;  %v1512_v12 = vsel %vm1496_vm9, %v1479_v36, %v1200_v58 }
 0x334   : > { %1938 = vmatmul.msk.f32.gmra.mxu1 %vm1529_vm10, %v1512_v12 }
 0x335   : > { %v1769_v42 = vsel %vm1705_vm6, %v1630_v33, %v1737_v22 }
 0x336   : > { %1801 = vst [vmem:[%s3981_s20 + $0x50] sm:$0xff] %v1769_v42 }
 0x33e   : > { %v1656_v31 = vpop.f32.mrf.mxu2  ;;  %v1680_v23 = vpop.f32.mrf.mxu3 }
 0x33f   : > { %v1657_v51 = vadd.f32 %v3969_v21, %v1656_v31  ;;  %v1681_v55 = vadd.f32 %v3969_v21, %v1680_v23 }
 0x341   : > { %vm1714_vm7 = vcmp.ge.f32.partialorder %v1657_v51, 0.0  ;;  %v1746_v9 = vmul.f32 0.2, %v1657_v51  ;;  %vm1722_vm8 = vcmp.ge.f32.partialorder %v1681_v55, 0.0  ;;  %v1754_v49 = vmul.f32 0.2, %v1681_v55 }
 0x343   : > { %v1778_v7 = vsel %vm1714_vm7, %v1657_v51, %v1746_v9  ;;  %v1786_v15 = vsel %vm1722_vm8, %v1681_v55, %v1754_v49 }
 0x344   : > { %1810 = vst [vmem:[%s3981_s20 + $0x98] sm:$0xff] %v1778_v7 }
 0x345   : > { %1818 = vst [vmem:[%s3981_s20 + $0xd8] sm:$0xff] %v1786_v15 }
 0x348   : > { %v1608_v41 = vpop.f32.mrf.mxu0  ;;  %v1632_v63 = vpop.f32.mrf.mxu1 }
 0x349   : > { %v1609_v47 = vadd.f32 %v3969_v21, %v1608_v41  ;;  %v1633_v45 = vadd.f32 %v3969_v21, %v1632_v63 }
 0x34b   : > { %vm1698_vm9 = vcmp.ge.f32.partialorder %v1609_v47, 0.0  ;;  %v1730_v35 = vmul.f32 0.2, %v1609_v47  ;;  %vm1706_vm10 = vcmp.ge.f32.partialorder %v1633_v45, 0.0  ;;  %v1738_v1 = vmul.f32 0.2, %v1633_v45 }
 0x34d   : > { %v1762_v5 = vsel %vm1698_vm9, %v1609_v47, %v1730_v35  ;;  %v1770_v43 = vsel %vm1706_vm10, %v1633_v45, %v1738_v1 }
 0x34e   : > { %1794 = vst [vmem:[%s3981_s20 + $0x18] sm:$0xff] %v1762_v5 }
 0x34f   : > { %1802 = vst [vmem:[%s3981_s20 + $0x58] sm:$0xff] %v1770_v43 }
 0x356   : > { %v1659_v46 = vpop.f32.mrf.mxu2 }
 0x357   : > { %v1660_v62 = vadd.f32 %v3969_v21, %v1659_v46  ;;  %v1683_v53 = vpop.f32.mrf.mxu3 }
 0x358   : > { %v1684_v27 = vadd.f32 %v3969_v21, %v1683_v53 }
 0x359   : > { %vm1715_vm11 = vcmp.ge.f32.partialorder %v1660_v62, 0.0  ;;  %v1747_v59 = vmul.f32 0.2, %v1660_v62  ;;  %v1635_v24 = vpop.f32.mrf.mxu1 }
 0x35a   : > { %vm1723_vm12 = vcmp.ge.f32.partialorder %v1684_v27, 0.0  ;;  %v1755_v4 = vmul.f32 0.2, %v1684_v27  ;;  %v1636_v30 = vadd.f32 %v3969_v21, %v1635_v24 }
 0x35b   : > { %v1779_v16 = vsel %vm1715_vm11, %v1660_v62, %v1747_v59 }
 0x35c   : > { %1811 = vst [vmem:[%s3981_s20 + $0xa0] sm:$0xff] %v1779_v16  ;;  %v1787_v18 = vsel %vm1723_vm12, %v1684_v27, %v1755_v4  ;;  %vm1707_vm13 = vcmp.ge.f32.partialorder %v1636_v30, 0.0  ;;  %v1739_v3 = vmul.f32 0.2, %v1636_v30 }
 0x35d   : > { %1819 = vst [vmem:[%s3981_s20 + $0xe0] sm:$0xff] %v1787_v18 }
 0x35e   : > { %v1771_v26 = vsel %vm1707_vm13, %v1636_v30, %v1739_v3 }
 0x35f   : > { %1803 = vst [vmem:[%s3981_s20 + $0x60] sm:$0xff] %v1771_v26 }
 0x360   : > { %v1611_v60 = vpop.f32.mrf.mxu0 }
 0x361   : > { %v1612_v40 = vadd.f32 %v3969_v21, %v1611_v60 }
 0x363   : > { %vm1699_vm14 = vcmp.ge.f32.partialorder %v1612_v40, 0.0  ;;  %v1731_v28 = vmul.f32 0.2, %v1612_v40 }
 0x365   : > { %v1763_v6 = vsel %vm1699_vm14, %v1612_v40, %v1731_v28 }
 0x366   : > { %1795 = vst [vmem:[%s3981_s20 + $0x20] sm:$0xff] %v1763_v6 }
 0x36f   : > { %v1662_v0 = vpop.f32.mrf.mxu2 }
 0x370   : > { %v1663_v50 = vadd.f32 %v3969_v21, %v1662_v0 }
 0x371   : > { %v1614_v39 = vpop.f32.mrf.mxu0 }
 0x372   : > { %vm1716_vm15 = vcmp.ge.f32.partialorder %v1663_v50, 0.0  ;;  %v1748_v17 = vmul.f32 0.2, %v1663_v50  ;;  %v1615_v14 = vadd.f32 %v3969_v21, %v1614_v39 }
 0x374   : > { %v1780_v44 = vsel %vm1716_vm15, %v1663_v50, %v1748_v17  ;;  %vm1700_vm0 = vcmp.ge.f32.partialorder %v1615_v14, 0.0  ;;  %v1732_v54 = vmul.f32 0.2, %v1615_v14 }
 0x375   : > { %1812 = vst [vmem:[%s3981_s20 + $0xa8] sm:$0xff] %v1780_v44 }
 0x376   : > { %v1764_v61 = vsel %vm1700_vm0, %v1615_v14, %v1732_v54  ;;  %v1686_v52 = vpop.f32.mrf.mxu3 }
 0x377   : > { %1796 = vst [vmem:[%s3981_s20 + $0x28] sm:$0xff] %v1764_v61  ;;  %v1687_v25 = vadd.f32 %v3969_v21, %v1686_v52 }
 0x379   : > { %vm1724_vm1 = vcmp.ge.f32.partialorder %v1687_v25, 0.0  ;;  %v1756_v13 = vmul.f32 0.2, %v1687_v25 }
 0x37b   : > { %v1788_v56 = vsel %vm1724_vm1, %v1687_v25, %v1756_v13 }
 0x37c   : > { %1820 = vst [vmem:[%s3981_s20 + $0xe8] sm:$0xff] %v1788_v56 }
 0x380   : > { %v1638_v32 = vpop.f32.mrf.mxu1 }
 0x381   : > { %v1639_v10 = vadd.f32 %v3969_v21, %v1638_v32 }
 0x383   : > { %vm1708_vm2 = vcmp.ge.f32.partialorder %v1639_v10, 0.0  ;;  %v1740_v8 = vmul.f32 0.2, %v1639_v10 }
 0x385   : > { %v1772_v34 = vsel %vm1708_vm2, %v1639_v10, %v1740_v8 }
 0x386   : > { %1804 = vst [vmem:[%s3981_s20 + $0x68] sm:$0xff] %v1772_v34 }
 0x38e   : > { %v1689_v37 = vpop.f32.mrf.mxu3 }
 0x38f   : > { %v1665_v19 = vpop.f32.mrf.mxu2  ;;  %v1690_v29 = vadd.f32 %v3969_v21, %v1689_v37 }
 0x390   : > { %v1666_v11 = vadd.f32 %v3969_v21, %v1665_v19 }
 0x391   : > { %vm1725_vm3 = vcmp.ge.f32.partialorder %v1690_v29, 0.0  ;;  %v1757_v2 = vmul.f32 0.2, %v1690_v29 }
 0x392   : > { %vm1717_vm4 = vcmp.ge.f32.partialorder %v1666_v11, 0.0  ;;  %v1749_v20 = vmul.f32 0.2, %v1666_v11 }
 0x393   : > { %v1789_v57 = vsel %vm1725_vm3, %v1690_v29, %v1757_v2 }
 0x394   : > { %v1781_v38 = vsel %vm1717_vm4, %v1666_v11, %v1749_v20  ;;  %1821 = vst [vmem:[%s3981_s20 + $0xf0] sm:$0xff] %v1789_v57 }
 0x395   : > { %1813 = vst [vmem:[%s3981_s20 + $0xb0] sm:$0xff] %v1781_v38 }
 0x398   : > { %v1641_v48 = vpop.f32.mrf.mxu1 }
 0x399   : > { %v1617_v33 = vpop.f32.mrf.mxu0  ;;  %v1642_v36 = vadd.f32 %v3969_v21, %v1641_v48 }
 0x39a   : > { %v1618_v58 = vadd.f32 %v3969_v21, %v1617_v33 }
 0x39b   : > { %vm1709_vm5 = vcmp.ge.f32.partialorder %v1642_v36, 0.0  ;;  %v1741_v22 = vmul.f32 0.2, %v1642_v36 }
 0x39c   : > { %vm1701_vm6 = vcmp.ge.f32.partialorder %v1618_v58, 0.0  ;;  %v1733_v12 = vmul.f32 0.2, %v1618_v58 }
 0x39d   : > { %v1773_v42 = vsel %vm1709_vm5, %v1642_v36, %v1741_v22 }
 0x39e   : > { %v1765_v31 = vsel %vm1701_vm6, %v1618_v58, %v1733_v12  ;;  %1805 = vst [vmem:[%s3981_s20 + $0x70] sm:$0xff] %v1773_v42 }
 0x39f   : > { %1797 = vst [vmem:[%s3981_s20 + $0x30] sm:$0xff] %v1765_v31 }
 0x3a6   : > { %v1668_v23 = vpop.f32.mrf.mxu2 }
 0x3a7   : > { %v1669_v51 = vadd.f32 %v3969_v21, %v1668_v23 }
 0x3a8   : > { %v1692_v55 = vpop.f32.mrf.mxu3 }
 0x3a9   : > { %vm1718_vm7 = vcmp.ge.f32.partialorder %v1669_v51, 0.0  ;;  %v1750_v9 = vmul.f32 0.2, %v1669_v51  ;;  %v1693_v49 = vadd.f32 %v3969_v21, %v1692_v55 }
 0x3aa   : > { %v1620_v7 = vpop.f32.mrf.mxu0 }
 0x3ab   : > { %v1782_v15 = vsel %vm1718_vm7, %v1669_v51, %v1750_v9  ;;  %vm1726_vm8 = vcmp.ge.f32.partialorder %v1693_v49, 0.0  ;;  %v1758_v41 = vmul.f32 0.2, %v1693_v49  ;;  %v1621_v63 = vadd.f32 %v3969_v21, %v1620_v7 }
 0x3ac   : > { %1814 = vst [vmem:[%s3981_s20 + $0xb8] sm:$0xff] %v1782_v15 }
 0x3ad   : > { %v1790_v47 = vsel %vm1726_vm8, %v1693_v49, %v1758_v41  ;;  %vm1702_vm9 = vcmp.ge.f32.partialorder %v1621_v63, 0.0  ;;  %v1734_v45 = vmul.f32 0.2, %v1621_v63 }
 0x3ae   : > { %1822 = vst [vmem:[%s3981_s20 + $0xf8] sm:$0xff] %v1790_v47 }
 0x3af   : > { %v1766_v35 = vsel %vm1702_vm9, %v1621_v63, %v1734_v45 }
 0x3b0   : > { %1798 = vst [vmem:[%s3981_s20 + $0x38] sm:$0xff] %v1766_v35 }
 0x3b1   : > { %v1644_v1 = vpop.f32.mrf.mxu1 }
 0x3b2   : > { %v1645_v5 = vadd.f32 %v3969_v21, %v1644_v1 }
 0x3b4   : > { %vm1710_vm10 = vcmp.ge.f32.partialorder %v1645_v5, 0.0  ;;  %v1742_v43 = vmul.f32 0.2, %v1645_v5 }
 0x3b6   : > { %v1774_v46 = vsel %vm1710_vm10, %v1645_v5, %v1742_v43 }
 0x3b7   : > { %1806 = vst [vmem:[%s3981_s20 + $0x78] sm:$0xff] %v1774_v46 }
 0x3b8 PF: > { %s13_s14 = sadd.s32 1, %s2092_s14   ;;  %s4527_s12 = smov %s2088_s13 }
 0x3b9   : > { %p10_p5 = scmp.ge.s32.totalorder %s13_s14, 4   ;;  %s4528_s13 = smov %s4530_s15 }
 0x3bb   :  { %12 = sbr.rel (!%p10_p5) target bundleno = 2 (0x2), region = 62 }

</bundles_post_ra>
